<compile_context>
chip_gen: v6e
topology: v6e:2x2x1
jax: 0.10.0
libtpu: 0.0.40
codegen_flags: <defaults>
</compile_context>

<pallas_src>
import functools

import jax
import jax.numpy as jnp
from jax import lax
from jax.experimental import pallas as pl
from jax.experimental.pallas import tpu as pltpu

SOS_TOKEN = 1
NEG_BIG = -1e30  # "minus infinity" for padded vocab logits / masked positions


def _round_up(x, m):
    return (x + m - 1) // m * m


def _cdiv(a, b):
    return -(-a // b)


def _luong_decoder_kernel(
    # inputs
    enc_ref,       # (Ns, Lp, Ep) bf16  this shard's zero-padded encoder states
    emb_ref,       # (Vp, Hp)     bf16  embedding table (padded rows/cols zero)
    wih_ref,       # (Hp, 4Hp)    bf16  LSTM W_ih^T (per-gate padded)
    whh_ref,       # (Hp, 4Hp)    bf16  LSTM W_hh^T (per-gate padded)
    blstm_ref,     # (1, 4Hp)     f32   b_ih + b_hh (per-gate padded)
    wa_ref,        # (Hp, Ep)     bf16  W_a.weight^T-ish: maps h -> enc space
    wcc_ref,       # (Ep, Hp)     bf16  W_c.weight^T rows for the context half
    wce_ref,       # (Hp, Hp)     bf16  W_c.weight^T rows for the embedded half
    bc_ref,        # (1, Hp)      f32
    wout_ref,      # (Hp, Vp)     bf16  fcout.weight^T, padded cols zero
    bout_ref,      # (1, Vp)      f32   padded cols = NEG_BIG
    # outputs
    dec_out_ref,   # (1, Ns, Vp)  f32   log_softmax logits for this step/shard
    attn_out_ref,  # (1, Ns, Lp)  f32   attention weights for this step/shard
    # scratch (persists across grid steps; per-shard because re-init at step 0)
    h_ref,         # (Ns, Hp) f32
    c_ref,         # (Ns, Hp) f32
    tok_ref,       # (Ns, 1) int32      current decoder input token
    *,
    src_len,       # true L (static Python int)
):
    step = pl.program_id(1)          # decode step (inner, "arbitrary")
    Ns, Lp, Ep = enc_ref.shape
    Vp, Hp = emb_ref.shape
    bf16 = jnp.bfloat16

    # ---- per-shard init of the recurrent state -------------------------------
    @pl.when(step == 0)
    def _():
        h_ref[...] = jnp.zeros_like(h_ref)
        c_ref[...] = jnp.zeros_like(c_ref)
        tok_ref[...] = jnp.full_like(tok_ref, SOS_TOKEN)

    # ---- embedding lookup (one-hot matmul; neutral at demo-sized V) ----------
    # TODO(synk): at large V, DMA-gather the Ns rows from an HBM-resident table
    # (token ids staged to SMEM) and stream the vocab projection in V-tiles with
    # an online logsumexp/argmax instead of keeping emb/wout fully VMEM-resident.
    tok = tok_ref[...]                                               # (Ns, 1)
    col_v = lax.broadcasted_iota(jnp.int32, (Ns, Vp), 1)
    onehot = (col_v == tok).astype(bf16)
    embedded = jnp.dot(onehot, emb_ref[...],
                       preferred_element_type=jnp.float32).astype(bf16)  # (Ns, Hp)

    # ---- single-layer LSTM cell (PyTorch gate order i, f, g, o) --------------
    h_bf = h_ref[...].astype(bf16)
    gates = (jnp.dot(embedded, wih_ref[...], preferred_element_type=jnp.float32)
             + jnp.dot(h_bf, whh_ref[...], preferred_element_type=jnp.float32)
             + blstm_ref[...])                                       # (Ns, 4Hp) f32
    i_g = jax.nn.sigmoid(gates[:, 0:Hp])
    f_g = jax.nn.sigmoid(gates[:, Hp:2 * Hp])
    g_g = jnp.tanh(gates[:, 2 * Hp:3 * Hp])
    o_g = jax.nn.sigmoid(gates[:, 3 * Hp:4 * Hp])
    c_new = f_g * c_ref[...] + i_g * g_g
    h_new = o_g * jnp.tanh(c_new)
    h_ref[...] = h_new
    c_ref[...] = c_new

    # ---- Luong "general" attention, fully batched over the sublane dim -------
    # W_a's bias is constant over source positions -> cancels under softmax, so
    # scores are just (h @ W_a) . enc_l  (attn weights & context unchanged).
    enc = enc_ref[...]                                               # (Ns, Lp, Ep) bf16
    q = jnp.dot(h_new.astype(bf16), wa_ref[...],
                preferred_element_type=jnp.float32)                  # (Ns, Ep) f32
    q3 = q.astype(bf16).reshape(Ns, 1, Ep)
    sc = jnp.einsum('bqe,ble->bql', q3, enc,
                    preferred_element_type=jnp.float32)              # (Ns, 1, Lp)
    lmask = lax.broadcasted_iota(jnp.int32, (1, 1, Lp), 2) < src_len
    sc = jnp.where(lmask, sc, NEG_BIG)                               # mask padded L
    m = jnp.max(sc, axis=-1, keepdims=True)
    p = jnp.exp(sc - m)
    attn3 = p * pl.reciprocal(jnp.sum(p, axis=-1, keepdims=True), approx=True)
    attn_out_ref[0, :, :] = attn3.reshape(Ns, Lp)                    # one slab store
    ctx = jnp.einsum('bql,ble->bqe', attn3.astype(bf16), enc,
                     preferred_element_type=jnp.float32).reshape(Ns, Ep)

    # ---- output projection: tanh(ctx@Wc_ctx + emb@Wc_emb + bc) -> fcout ------
    pre = jnp.tanh(
        jnp.dot(ctx.astype(bf16), wcc_ref[...], preferred_element_type=jnp.float32)
        + jnp.dot(embedded, wce_ref[...], preferred_element_type=jnp.float32)
        + bc_ref[...])                                               # (Ns, Hp) f32
    logits = (jnp.dot(pre.astype(bf16), wout_ref[...],
                      preferred_element_type=jnp.float32)
              + bout_ref[...])                                       # (Ns, Vp) f32

    # ---- log_softmax over vocab (padded cols are ~-1e30 -> exp underflows) ---
    l_max = jnp.max(logits, axis=-1, keepdims=True)
    z = logits - l_max
    logp = z - jnp.log(jnp.sum(jnp.exp(z), axis=-1, keepdims=True))
    dec_out_ref[0, :, :] = logp                                      # (Ns, Vp) dense

    # ---- greedy argmax feeds the next decode step (topk(1) tie-break) --------
    nxt = jnp.min(jnp.where(logits == l_max, col_v, Vp), axis=-1, keepdims=True)
    tok_ref[...] = nxt.astype(jnp.int32)


def _resident_vmem_spec():
    # Whole-array VMEM residency: not windowed per grid step, so the constant
    # weights are DMA'd in once and not double-buffered across decode steps.
    return pl.BlockSpec(memory_space=pltpu.MemorySpace.VMEM)


def luong_decoder_forward(enc_hidden_states, params):
    N, L, E = enc_hidden_states.shape
    V, H = params["emb"].shape

    Lp = _round_up(L, 128)    # lane-aligned attention width
    Vp = _round_up(V, 128)    # lane-aligned vocab
    Hp = _round_up(H, 128)    # lane-aligned hidden (gates/h/c/matmul N dims)
    Ep = _round_up(E, 128)    # lane-aligned encoder feature dim

    # batch shards: one per TensorCore on v7x; single shard on 1-TC chips /
    # small batches.  Each shard is sublane-aligned (multiple of 8 rows).
    num_shards = 2 if N > 8 else 1
    Ns = _round_up(_cdiv(N, num_shards), 8)
    Np = num_shards * Ns

    f32, bf16 = jnp.float32, jnp.bfloat16

    # ---- wrapper-side padding / dtype casts (all matmul operands -> bf16) ----
    enc_p = jnp.pad(enc_hidden_states.astype(f32),
                    ((0, Np - N), (0, Lp - L), (0, Ep - E))).astype(bf16)
    emb_p = jnp.pad(params["emb"], ((0, Vp - V), (0, Hp - H))).astype(bf16)

    def pad_gates(w):  # (H, 4H) -> (Hp, 4Hp) keeping PyTorch [i|f|g|o] blocks
        w4 = w.reshape(H, 4, H)
        w4 = jnp.pad(w4, ((0, Hp - H), (0, 0), (0, Hp - H)))
        return w4.reshape(Hp, 4 * Hp)

    wih_p = pad_gates(params["wih_t"]).astype(bf16)
    whh_p = pad_gates(params["whh_t"]).astype(bf16)
    blstm_p = jnp.pad(params["b_lstm"].reshape(1, 4, H),
                      ((0, 0), (0, 0), (0, Hp - H))).reshape(1, 4 * Hp).astype(f32)

    # W_a bias is NOT passed: softmax over source positions is shift-invariant,
    # so the bias term (constant across L) cancels; attn weights are unchanged.
    wa_p = jnp.pad(params["wa"], ((0, Hp - H), (0, Ep - E))).astype(bf16)

    # Split W_c so no lane-dim concat is needed in-kernel.
    wcc_p = jnp.pad(params["wc_t"][:E, :], ((0, Ep - E), (0, Hp - H))).astype(bf16)
    wce_p = jnp.pad(params["wc_t"][E:, :], ((0, Hp - H), (0, Hp - H))).astype(bf16)
    bc_p = jnp.pad(params["bc"], ((0, 0), (0, Hp - H))).astype(f32)

    wout_p = jnp.pad(params["wout_t"], ((0, Hp - H), (0, Vp - V))).astype(bf16)
    bout_p = jnp.pad(params["bout"], ((0, 0), (0, Vp - V)),
                     constant_values=NEG_BIG).astype(f32)

    kernel = functools.partial(_luong_decoder_kernel, src_len=L)

    in_arrays = (enc_p, emb_p, wih_p, whh_p, blstm_p, wa_p,
                 wcc_p, wce_p, bc_p, wout_p, bout_p)
    in_specs = ([pl.BlockSpec((Ns, Lp, Ep), lambda s, t: (s, 0, 0))]
                + [_resident_vmem_spec() for _ in range(len(in_arrays) - 1)])

    out_specs = [
        pl.BlockSpec((1, Ns, Vp), lambda s, t: (t, s, 0)),
        pl.BlockSpec((1, Ns, Lp), lambda s, t: (t, s, 0)),
    ]
    out_shape = (
        jax.ShapeDtypeStruct((L, Np, Vp), jnp.float32),
        jax.ShapeDtypeStruct((L, Np, Lp), jnp.float32),
    )
    scratch_shapes = [
        pltpu.VMEM((Ns, Hp), jnp.float32),   # LSTM hidden state (per shard)
        pltpu.VMEM((Ns, Hp), jnp.float32),   # LSTM cell state (per shard)
        pltpu.VMEM((Ns, 1), jnp.int32),      # current decoder input token
    ]

    dec_tnv, attn_tnl = pl.pallas_call(
        kernel,
        out_shape=out_shape,
        grid_spec=pltpu.PrefetchScalarGridSpec(
            num_scalar_prefetch=0,
            grid=(num_shards, L),             # (batch shard, decode step)
            in_specs=in_specs,
            out_specs=out_specs,
            scratch_shapes=scratch_shapes,
        ),
        compiler_params=pltpu.CompilerParams(
            # shard axis parallel (v7x megacore); decode axis sequential
            # (state carried in scratch, re-initialised at step 0 per shard).
            dimension_semantics=("parallel", "arbitrary"),
            # <= v7x's 64 MiB VMEM budget; v5e/v6e (128 MiB) could raise this.
            vmem_limit_bytes=48 * 1024 * 1024,
        ),
    )(*in_arrays)

    # back to PyTorch layout, drop padding: (N, T, V), (N, T, L)
    dec_outputs = jnp.transpose(dec_tnv, (1, 0, 2))[:N, :, :V]
    attn_weights = jnp.transpose(attn_tnl, (1, 0, 2))[:N, :, :L]
    return dec_outputs, attn_weights


def init_params(key, vocab_size, hidden_size, enc_hidden_size):
    V, H, E = vocab_size, hidden_size, enc_hidden_size
    ks = jax.random.split(key, 10)
    sc = 0.1
    n = lambda k, shape: jax.random.normal(k, shape, jnp.float32) * sc
    # TODO(synk): only the num_layers=1 LSTM path is implemented in-kernel.
    return {
        "emb":    n(ks[0], (V, H)),          # nn.Embedding(V, H)
        "wih_t":  n(ks[1], (H, 4 * H)),      # LSTM weight_ih_l0^T
        "whh_t":  n(ks[2], (H, 4 * H)),      # LSTM weight_hh_l0^T
        "b_lstm": n(ks[3], (1, 4 * H)),      # bias_ih_l0 + bias_hh_l0 (pre-summed)
        "wa":     n(ks[4], (H, E)),          # W_a.weight (general attention)
        "ba":     n(ks[5], (H,)),            # W_a.bias (unused: cancels in softmax)
        "wc_t":   n(ks[6], (E + H, H)),      # W_c.weight^T (rows: [context; embedded])
        "bc":     n(ks[7], (1, H)),          # W_c.bias
        "wout_t": n(ks[8], (H, V)),          # fcout.weight^T
        "bout":   n(ks[9], (1, V)),          # fcout.bias
    }


if __name__ == "__main__":
    N, L, E, H, V = 2, 8, 32, 32, 64
    key = jax.random.PRNGKey(0)
    k_enc, k_par = jax.random.split(key)
    enc_hidden_states = jax.random.normal(k_enc, (N, L, E), jnp.float32)
    params = init_params(k_par, V, H, E)

    dec_outputs, attn_weights = jax.jit(luong_decoder_forward)(enc_hidden_states, params)
    jax.block_until_ready((dec_outputs, attn_weights))

    assert dec_outputs.shape == (N, L, V)
    assert attn_weights.shape == (N, L, L)
    assert bool(jnp.all(jnp.isfinite(dec_outputs)))
    assert bool(jnp.all(jnp.isfinite(attn_weights)))
    # attention rows over the true source length must sum to ~1
    assert bool(jnp.all(jnp.abs(jnp.sum(attn_weights, axis=-1) - 1.0) < 1e-2))
    print("KERNEL_OK")
</pallas_src>

<mosaic_0001>
module attributes {stable_mosaic.version = 11 : i64} {
  func.func @_luong_decoder_kernel(%arg0: i32, %arg1: i32, %arg2: memref<8x128x128xbf16, #tpu.memory_space<vmem>>, %arg3: memref<128x128xbf16, #tpu.memory_space<vmem>>, %arg4: memref<128x512xbf16, #tpu.memory_space<vmem>>, %arg5: memref<128x512xbf16, #tpu.memory_space<vmem>>, %arg6: memref<1x512xf32, #tpu.memory_space<vmem>>, %arg7: memref<128x128xbf16, #tpu.memory_space<vmem>>, %arg8: memref<128x128xbf16, #tpu.memory_space<vmem>>, %arg9: memref<128x128xbf16, #tpu.memory_space<vmem>>, %arg10: memref<1x128xf32, #tpu.memory_space<vmem>>, %arg11: memref<128x128xbf16, #tpu.memory_space<vmem>>, %arg12: memref<1x128xf32, #tpu.memory_space<vmem>>, %arg13: memref<1x8x128xf32, #tpu.memory_space<vmem>>, %arg14: memref<1x8x128xf32, #tpu.memory_space<vmem>>, %arg15: memref<8x128xf32, #tpu.memory_space<vmem>>, %arg16: memref<8x128xf32, #tpu.memory_space<vmem>>, %arg17: memref<8x1xi32, #tpu.memory_space<vmem>>) attributes {dimension_semantics = [#tpu.dimension_semantics<parallel>, #tpu.dimension_semantics<arbitrary>], iteration_bounds = array<i64: 1, 8>, scalar_prefetch = 0 : i64, scratch_operands = 3 : i64, tpu.core_type = #tpu.core_type<tc>, window_params = [{transform_indices = @transform_0, window_bounds = array<i64: 8, 128, 128>}, {pipeline_mode = #tpu.pipeline_mode<synchronous>, transform_indices = @transform_1, window_bounds = array<i64: 128, 128>}, {pipeline_mode = #tpu.pipeline_mode<synchronous>, transform_indices = @transform_2, window_bounds = array<i64: 128, 512>}, {pipeline_mode = #tpu.pipeline_mode<synchronous>, transform_indices = @transform_3, window_bounds = array<i64: 128, 512>}, {pipeline_mode = #tpu.pipeline_mode<synchronous>, transform_indices = @transform_4, window_bounds = array<i64: 1, 512>}, {pipeline_mode = #tpu.pipeline_mode<synchronous>, transform_indices = @transform_5, window_bounds = array<i64: 128, 128>}, {pipeline_mode = #tpu.pipeline_mode<synchronous>, transform_indices = @transform_6, window_bounds = array<i64: 128, 128>}, {pipeline_mode = #tpu.pipeline_mode<synchronous>, transform_indices = @transform_7, window_bounds = array<i64: 128, 128>}, {pipeline_mode = #tpu.pipeline_mode<synchronous>, transform_indices = @transform_8, window_bounds = array<i64: 1, 128>}, {pipeline_mode = #tpu.pipeline_mode<synchronous>, transform_indices = @transform_9, window_bounds = array<i64: 128, 128>}, {pipeline_mode = #tpu.pipeline_mode<synchronous>, transform_indices = @transform_10, window_bounds = array<i64: 1, 128>}, {transform_indices = @transform_11, window_bounds = array<i64: 1, 8, 128>}, {transform_indices = @transform_12, window_bounds = array<i64: 1, 8, 128>}]} {
    %c0_i32 = arith.constant 0 : i32
    %0 = arith.cmpi eq, %arg1, %c0_i32 : i32
    %1 = arith.extui %0 : i1 to i32
    %c0_i32_0 = arith.constant 0 : i32
    %2 = arith.cmpi ne, %1, %c0_i32_0 : i32
    scf.if %2 {
      %cst_58 = arith.constant 0.000000e+00 : f32
      %118 = vector.broadcast %cst_58 : f32 to vector<8x128xf32>
      %c0_59 = arith.constant 0 : index
      %c0_60 = arith.constant 0 : index
      %119 = vector.load %arg15[%c0_59, %c0_60] : memref<8x128xf32, #tpu.memory_space<vmem>>, vector<8x128xf32>
      tpu.vector_store %arg15[%c0_59, %c0_60], %118 {strides = array<i32>} : memref<8x128xf32, #tpu.memory_space<vmem>>, vector<8x128xf32>,
      %cst_61 = arith.constant 0.000000e+00 : f32
      %120 = vector.broadcast %cst_61 : f32 to vector<8x128xf32>
      %c0_62 = arith.constant 0 : index
      %c0_63 = arith.constant 0 : index
      %121 = vector.load %arg16[%c0_62, %c0_63] : memref<8x128xf32, #tpu.memory_space<vmem>>, vector<8x128xf32>
      tpu.vector_store %arg16[%c0_62, %c0_63], %120 {strides = array<i32>} : memref<8x128xf32, #tpu.memory_space<vmem>>, vector<8x128xf32>,
      %c1_i32 = arith.constant 1 : i32
      %122 = vector.broadcast %c1_i32 : i32 to vector<8x1xi32>
      %c0_64 = arith.constant 0 : index
      %c0_65 = arith.constant 0 : index
      %123 = vector.load %arg17[%c0_64, %c0_65] : memref<8x1xi32, #tpu.memory_space<vmem>>, vector<8x1xi32>
      tpu.vector_store %arg17[%c0_64, %c0_65], %122 {strides = array<i32>} : memref<8x1xi32, #tpu.memory_space<vmem>>, vector<8x1xi32>,
    } else {
    }
    %c0 = arith.constant 0 : index
    %c0_1 = arith.constant 0 : index
    %3 = vector.load %arg17[%c0, %c0_1] : memref<8x1xi32, #tpu.memory_space<vmem>>, vector<8x1xi32>
    %4 = tpu.iota {dimensions = array<i32: 1>} : vector<8x128xi32>
    %5 = vector.broadcast %3 : vector<8x1xi32> to vector<8x128xi32>
    %6 = arith.cmpi eq, %4, %5 : vector<8x128xi32>
    %7 = arith.extui %6 : vector<8x128xi1> to vector<8x128xi32>
    %8 = arith.sitofp %7 : vector<8x128xi32> to vector<8x128xf32>
    %9 = arith.truncf %8 : vector<8x128xf32> to vector<8x128xbf16>
    %c0_2 = arith.constant 0 : index
    %c0_3 = arith.constant 0 : index
    %10 = vector.load %arg3[%c0_2, %c0_3] : memref<128x128xbf16, #tpu.memory_space<vmem>>, vector<128x128xbf16>
    %cst = arith.constant dense<0.000000e+00> : vector<8x128xf32>
    %11 = tpu.matmul %9, %10, %cst {dimension_numbers = #tpu.dot_dimension_numbers<[1], [0], [0], [1], [0, 0, 1, 1], [], []>} : vector<8x128xbf16>, vector<128x128xbf16>, vector<8x128xf32> -> vector<8x128xf32>
    %12 = arith.truncf %11 : vector<8x128xf32> to vector<8x128xbf16>
    %c0_4 = arith.constant 0 : index
    %c0_5 = arith.constant 0 : index
    %13 = vector.load %arg15[%c0_4, %c0_5] : memref<8x128xf32, #tpu.memory_space<vmem>>, vector<8x128xf32>
    %14 = arith.truncf %13 : vector<8x128xf32> to vector<8x128xbf16>
    %c0_6 = arith.constant 0 : index
    %c0_7 = arith.constant 0 : index
    %15 = vector.load %arg4[%c0_6, %c0_7] : memref<128x512xbf16, #tpu.memory_space<vmem>>, vector<128x512xbf16>
    %cst_8 = arith.constant dense<0.000000e+00> : vector<8x512xf32>
    %16 = tpu.matmul %12, %15, %cst_8 {dimension_numbers = #tpu.dot_dimension_numbers<[1], [0], [0], [1], [0, 0, 1, 1], [], []>} : vector<8x128xbf16>, vector<128x512xbf16>, vector<8x512xf32> -> vector<8x512xf32>
    %c0_9 = arith.constant 0 : index
    %c0_10 = arith.constant 0 : index
    %17 = vector.load %arg5[%c0_9, %c0_10] : memref<128x512xbf16, #tpu.memory_space<vmem>>, vector<128x512xbf16>
    %cst_11 = arith.constant dense<0.000000e+00> : vector<8x512xf32>
    %18 = tpu.matmul %14, %17, %cst_11 {dimension_numbers = #tpu.dot_dimension_numbers<[1], [0], [0], [1], [0, 0, 1, 1], [], []>} : vector<8x128xbf16>, vector<128x512xbf16>, vector<8x512xf32> -> vector<8x512xf32>
    %19 = arith.addf %16, %18 : vector<8x512xf32>
    %c0_12 = arith.constant 0 : index
    %c0_13 = arith.constant 0 : index
    %20 = vector.load %arg6[%c0_12, %c0_13] : memref<1x512xf32, #tpu.memory_space<vmem>>, vector<1x512xf32>
    %21 = vector.broadcast %20 : vector<1x512xf32> to vector<8x512xf32>
    %22 = arith.addf %19, %21 : vector<8x512xf32>
    %23 = vector.extract_strided_slice %22 {offsets = [0, 0], sizes = [8, 128], strides = [1, 1]} : vector<8x512xf32> to vector<8x128xf32>
    %24 = arith.negf %23 : vector<8x128xf32>
    %25 = math.exp %24 : vector<8x128xf32>
    %cst_14 = arith.constant 1.000000e+00 : f32
    %26 = vector.broadcast %cst_14 : f32 to vector<8x128xf32>
    %27 = arith.addf %26, %25 : vector<8x128xf32>
    %28 = arith.divf %26, %27 : vector<8x128xf32>
    %29 = vector.extract_strided_slice %22 {offsets = [0, 128], sizes = [8, 128], strides = [1, 1]} : vector<8x512xf32> to vector<8x128xf32>
    %30 = arith.negf %29 : vector<8x128xf32>
    %31 = math.exp %30 : vector<8x128xf32>
    %cst_15 = arith.constant 1.000000e+00 : f32
    %32 = vector.broadcast %cst_15 : f32 to vector<8x128xf32>
    %33 = arith.addf %32, %31 : vector<8x128xf32>
    %34 = arith.divf %32, %33 : vector<8x128xf32>
    %35 = vector.extract_strided_slice %22 {offsets = [0, 256], sizes = [8, 128], strides = [1, 1]} : vector<8x512xf32> to vector<8x128xf32>
    %36 = math.tanh %35 : vector<8x128xf32>
    %37 = vector.extract_strided_slice %22 {offsets = [0, 384], sizes = [8, 128], strides = [1, 1]} : vector<8x512xf32> to vector<8x128xf32>
    %38 = arith.negf %37 : vector<8x128xf32>
    %39 = math.exp %38 : vector<8x128xf32>
    %cst_16 = arith.constant 1.000000e+00 : f32
    %40 = vector.broadcast %cst_16 : f32 to vector<8x128xf32>
    %41 = arith.addf %40, %39 : vector<8x128xf32>
    %42 = arith.divf %40, %41 : vector<8x128xf32>
    %c0_17 = arith.constant 0 : index
    %c0_18 = arith.constant 0 : index
    %43 = vector.load %arg16[%c0_17, %c0_18] : memref<8x128xf32, #tpu.memory_space<vmem>>, vector<8x128xf32>
    %44 = arith.mulf %34, %43 : vector<8x128xf32>
    %45 = arith.mulf %28, %36 : vector<8x128xf32>
    %46 = arith.addf %44, %45 : vector<8x128xf32>
    %47 = math.tanh %46 : vector<8x128xf32>
    %48 = arith.mulf %42, %47 : vector<8x128xf32>
    %c0_19 = arith.constant 0 : index
    %c0_20 = arith.constant 0 : index
    %49 = vector.load %arg15[%c0_19, %c0_20] : memref<8x128xf32, #tpu.memory_space<vmem>>, vector<8x128xf32>
    tpu.vector_store %arg15[%c0_19, %c0_20], %48 {strides = array<i32>} : memref<8x128xf32, #tpu.memory_space<vmem>>, vector<8x128xf32>,
    %c0_21 = arith.constant 0 : index
    %c0_22 = arith.constant 0 : index
    %50 = vector.load %arg16[%c0_21, %c0_22] : memref<8x128xf32, #tpu.memory_space<vmem>>, vector<8x128xf32>
    tpu.vector_store %arg16[%c0_21, %c0_22], %46 {strides = array<i32>} : memref<8x128xf32, #tpu.memory_space<vmem>>, vector<8x128xf32>,
    %c0_23 = arith.constant 0 : index
    %c0_24 = arith.constant 0 : index
    %c0_25 = arith.constant 0 : index
    %51 = vector.load %arg2[%c0_23, %c0_24, %c0_25] : memref<8x128x128xbf16, #tpu.memory_space<vmem>>, vector<8x128x128xbf16>
    %52 = arith.truncf %48 : vector<8x128xf32> to vector<8x128xbf16>
    %c0_26 = arith.constant 0 : index
    %c0_27 = arith.constant 0 : index
    %53 = vector.load %arg7[%c0_26, %c0_27] : memref<128x128xbf16, #tpu.memory_space<vmem>>, vector<128x128xbf16>
    %cst_28 = arith.constant dense<0.000000e+00> : vector<8x128xf32>
    %54 = tpu.matmul %52, %53, %cst_28 {dimension_numbers = #tpu.dot_dimension_numbers<[1], [0], [0], [1], [0, 0, 1, 1], [], []>} : vector<8x128xbf16>, vector<128x128xbf16>, vector<8x128xf32> -> vector<8x128xf32>
    %55 = arith.truncf %54 : vector<8x128xf32> to vector<8x128xbf16>
    %56 = vector.shape_cast %55 : vector<8x128xbf16> to vector<8x1x128xbf16>
    "tpu.trace_start"() <{level = 10 : i32, message = "bqe,ble->bql"}> : () -> ()
    %cst_29 = arith.constant dense<0.000000e+00> : vector<8x1x128xf32>
    %57 = tpu.matmul %56, %51, %cst_29 {dimension_numbers = #tpu.dot_dimension_numbers<[2], [2], [1], [1], [0, 0, 0, 1, 1, 1], [0], [0]>} : vector<8x1x128xbf16>, vector<8x128x128xbf16>, vector<8x1x128xf32> -> vector<8x1x128xf32>
    "tpu.trace_stop"() : () -> ()
    %58 = tpu.iota {dimensions = array<i32: 2>} : vector<1x1x128xi32>
    %c8_i32 = arith.constant 8 : i32
    %59 = vector.broadcast %c8_i32 : i32 to vector<1x1x128xi32>
    %60 = arith.cmpi slt, %58, %59 : vector<1x1x128xi32>
    %cst_30 = arith.constant -1.000000e+30 : f32
    %61 = vector.shape_cast %60 : vector<1x1x128xi1> to vector<1x1x128xi1>
    %62 = vector.broadcast %61 : vector<1x1x128xi1> to vector<8x1x128xi1>
    %63 = vector.broadcast %cst_30 : f32 to vector<8x1x128xf32>
    %64 = arith.select %62, %57, %63 : vector<8x1x128xi1>, vector<8x1x128xf32>
    %cst_31 = arith.constant dense<0xFF800000> : vector<8x1xf32>
    %65 = vector.multi_reduction <maximumf>, %64, %cst_31 [2] : vector<8x1x128xf32> to vector<8x1xf32>
    %66 = vector.shape_cast %65 : vector<8x1xf32> to vector<8x1x1xf32>
    %67 = vector.broadcast %66 : vector<8x1x1xf32> to vector<8x1x128xf32>
    %68 = arith.subf %64, %67 : vector<8x1x128xf32>
    %69 = math.exp %68 : vector<8x1x128xf32>
    %cst_32 = arith.constant dense<0.000000e+00> : vector<8x1xf32>
    %70 = vector.multi_reduction <add>, %69, %cst_32 [2] : vector<8x1x128xf32> to vector<8x1xf32>
    %71 = vector.shape_cast %70 : vector<8x1xf32> to vector<8x1x1xf32>
    %72 = tpu.reciprocal %71 {approx = true} : vector<8x1x1xf32> -> vector<8x1x1xf32>
    %73 = vector.broadcast %72 : vector<8x1x1xf32> to vector<8x1x128xf32>
    %74 = arith.mulf %69, %73 : vector<8x1x128xf32>
    %75 = vector.shape_cast %74 : vector<8x1x128xf32> to vector<8x128xf32>
    %c0_33 = arith.constant 0 : index
    %c0_34 = arith.constant 0 : index
    %c0_35 = arith.constant 0 : index
    %76 = vector.load %arg14[%c0_33, %c0_34, %c0_35] : memref<1x8x128xf32, #tpu.memory_space<vmem>>, vector<1x8x128xf32>
    %77 = vector.shape_cast %76 : vector<1x8x128xf32> to vector<8x128xf32>
    %78 = vector.shape_cast %75 : vector<8x128xf32> to vector<1x8x128xf32>
    tpu.vector_store %arg14[%c0_33, %c0_34, %c0_35], %78 {strides = array<i32>} : memref<1x8x128xf32, #tpu.memory_space<vmem>>, vector<1x8x128xf32>,
    %79 = arith.truncf %74 : vector<8x1x128xf32> to vector<8x1x128xbf16>
    "tpu.trace_start"() <{level = 10 : i32, message = "bql,ble->bqe"}> : () -> ()
    %cst_36 = arith.constant dense<0.000000e+00> : vector<8x1x128xf32>
    %80 = tpu.matmul %79, %51, %cst_36 {dimension_numbers = #tpu.dot_dimension_numbers<[2], [1], [1], [2], [0, 0, 0, 1, 1, 2], [0], [0]>} : vector<8x1x128xbf16>, vector<8x128x128xbf16>, vector<8x1x128xf32> -> vector<8x1x128xf32>
    "tpu.trace_stop"() : () -> ()
    %81 = vector.shape_cast %80 : vector<8x1x128xf32> to vector<8x128xf32>
    %82 = arith.truncf %81 : vector<8x128xf32> to vector<8x128xbf16>
    %c0_37 = arith.constant 0 : index
    %c0_38 = arith.constant 0 : index
    %83 = vector.load %arg8[%c0_37, %c0_38] : memref<128x128xbf16, #tpu.memory_space<vmem>>, vector<128x128xbf16>
    %cst_39 = arith.constant dense<0.000000e+00> : vector<8x128xf32>
    %84 = tpu.matmul %82, %83, %cst_39 {dimension_numbers = #tpu.dot_dimension_numbers<[1], [0], [0], [1], [0, 0, 1, 1], [], []>} : vector<8x128xbf16>, vector<128x128xbf16>, vector<8x128xf32> -> vector<8x128xf32>
    %c0_40 = arith.constant 0 : index
    %c0_41 = arith.constant 0 : index
    %85 = vector.load %arg9[%c0_40, %c0_41] : memref<128x128xbf16, #tpu.memory_space<vmem>>, vector<128x128xbf16>
    %cst_42 = arith.constant dense<0.000000e+00> : vector<8x128xf32>
    %86 = tpu.matmul %12, %85, %cst_42 {dimension_numbers = #tpu.dot_dimension_numbers<[1], [0], [0], [1], [0, 0, 1, 1], [], []>} : vector<8x128xbf16>, vector<128x128xbf16>, vector<8x128xf32> -> vector<8x128xf32>
    %87 = arith.addf %84, %86 : vector<8x128xf32>
    %c0_43 = arith.constant 0 : index
    %c0_44 = arith.constant 0 : index
    %88 = vector.load %arg10[%c0_43, %c0_44] : memref<1x128xf32, #tpu.memory_space<vmem>>, vector<1x128xf32>
    %89 = vector.broadcast %88 : vector<1x128xf32> to vector<8x128xf32>
    %90 = arith.addf %87, %89 : vector<8x128xf32>
    %91 = math.tanh %90 : vector<8x128xf32>
    %92 = arith.truncf %91 : vector<8x128xf32> to vector<8x128xbf16>
    %c0_45 = arith.constant 0 : index
    %c0_46 = arith.constant 0 : index
    %93 = vector.load %arg11[%c0_45, %c0_46] : memref<128x128xbf16, #tpu.memory_space<vmem>>, vector<128x128xbf16>
    %cst_47 = arith.constant dense<0.000000e+00> : vector<8x128xf32>
    %94 = tpu.matmul %92, %93, %cst_47 {dimension_numbers = #tpu.dot_dimension_numbers<[1], [0], [0], [1], [0, 0, 1, 1], [], []>} : vector<8x128xbf16>, vector<128x128xbf16>, vector<8x128xf32> -> vector<8x128xf32>
    %c0_48 = arith.constant 0 : index
    %c0_49 = arith.constant 0 : index
    %95 = vector.load %arg12[%c0_48, %c0_49] : memref<1x128xf32, #tpu.memory_space<vmem>>, vector<1x128xf32>
    %96 = vector.broadcast %95 : vector<1x128xf32> to vector<8x128xf32>
    %97 = arith.addf %94, %96 : vector<8x128xf32>
    %cst_50 = arith.constant dense<0xFF800000> : vector<8xf32>
    %98 = vector.multi_reduction <maximumf>, %97, %cst_50 [1] : vector<8x128xf32> to vector<8xf32>
    %99 = vector.shape_cast %98 : vector<8xf32> to vector<8x1xf32>
    %100 = vector.broadcast %99 : vector<8x1xf32> to vector<8x128xf32>
    %101 = arith.subf %97, %100 : vector<8x128xf32>
    %102 = math.exp %101 : vector<8x128xf32>
    %cst_51 = arith.constant dense<0.000000e+00> : vector<8xf32>
    %103 = vector.multi_reduction <add>, %102, %cst_51 [1] : vector<8x128xf32> to vector<8xf32>
    %104 = vector.shape_cast %103 : vector<8xf32> to vector<8x1xf32>
    %105 = math.log %104 : vector<8x1xf32>
    %106 = vector.broadcast %105 : vector<8x1xf32> to vector<8x128xf32>
    %107 = arith.subf %101, %106 : vector<8x128xf32>
    %c0_52 = arith.constant 0 : index
    %c0_53 = arith.constant 0 : index
    %c0_54 = arith.constant 0 : index
    %108 = vector.load %arg13[%c0_52, %c0_53, %c0_54] : memref<1x8x128xf32, #tpu.memory_space<vmem>>, vector<1x8x128xf32>
    %109 = vector.shape_cast %108 : vector<1x8x128xf32> to vector<8x128xf32>
    %110 = vector.shape_cast %107 : vector<8x128xf32> to vector<1x8x128xf32>
    tpu.vector_store %arg13[%c0_52, %c0_53, %c0_54], %110 {strides = array<i32>} : memref<1x8x128xf32, #tpu.memory_space<vmem>>, vector<1x8x128xf32>,
    %111 = vector.broadcast %99 : vector<8x1xf32> to vector<8x128xf32>
    %112 = arith.cmpf oeq, %97, %111 : vector<8x128xf32>
    %c128_i32 = arith.constant 128 : i32
    %113 = vector.broadcast %c128_i32 : i32 to vector<8x128xi32>
    %114 = arith.select %112, %4, %113 : vector<8x128xi1>, vector<8x128xi32>
    %cst_55 = arith.constant dense<2147483647> : vector<8xi32>
    %115 = vector.multi_reduction <minsi>, %114, %cst_55 [1] : vector<8x128xi32> to vector<8xi32>
    %116 = vector.shape_cast %115 : vector<8xi32> to vector<8x1xi32>
    %c0_56 = arith.constant 0 : index
    %c0_57 = arith.constant 0 : index
    %117 = vector.load %arg17[%c0_56, %c0_57] : memref<8x1xi32, #tpu.memory_space<vmem>>, vector<8x1xi32>
    tpu.vector_store %arg17[%c0_56, %c0_57], %116 {strides = array<i32>} : memref<8x1xi32, #tpu.memory_space<vmem>>, vector<8x1xi32>,
    return
  }
  func.func @transform_0(%arg0: i32, %arg1: i32) -> (i32, i32, i32) {
    %c0_i32 = arith.constant 0 : i32
    %c0_i32_0 = arith.constant 0 : i32
    %c0_i32_1 = arith.constant 0 : i32
    return %arg0, %c0_i32, %c0_i32_0 : i32, i32, i32
  }
  func.func @transform_1(%arg0: i32, %arg1: i32) -> (i32, i32) {
    %c0_i32 = arith.constant 0 : i32
    %c0_i32_0 = arith.constant 0 : i32
    %c0_i32_1 = arith.constant 0 : i32
    return %c0_i32, %c0_i32_0 : i32, i32
  }
  func.func @transform_2(%arg0: i32, %arg1: i32) -> (i32, i32) {
    %c0_i32 = arith.constant 0 : i32
    %c0_i32_0 = arith.constant 0 : i32
    %c0_i32_1 = arith.constant 0 : i32
    return %c0_i32, %c0_i32_0 : i32, i32
  }
  func.func @transform_3(%arg0: i32, %arg1: i32) -> (i32, i32) {
    %c0_i32 = arith.constant 0 : i32
    %c0_i32_0 = arith.constant 0 : i32
    %c0_i32_1 = arith.constant 0 : i32
    return %c0_i32, %c0_i32_0 : i32, i32
  }
  func.func @transform_4(%arg0: i32, %arg1: i32) -> (i32, i32) {
    %c0_i32 = arith.constant 0 : i32
    %c0_i32_0 = arith.constant 0 : i32
    %c0_i32_1 = arith.constant 0 : i32
    return %c0_i32, %c0_i32_0 : i32, i32
  }
  func.func @transform_5(%arg0: i32, %arg1: i32) -> (i32, i32) {
    %c0_i32 = arith.constant 0 : i32
    %c0_i32_0 = arith.constant 0 : i32
    %c0_i32_1 = arith.constant 0 : i32
    return %c0_i32, %c0_i32_0 : i32, i32
  }
  func.func @transform_6(%arg0: i32, %arg1: i32) -> (i32, i32) {
    %c0_i32 = arith.constant 0 : i32
    %c0_i32_0 = arith.constant 0 : i32
    %c0_i32_1 = arith.constant 0 : i32
    return %c0_i32, %c0_i32_0 : i32, i32
  }
  func.func @transform_7(%arg0: i32, %arg1: i32) -> (i32, i32) {
    %c0_i32 = arith.constant 0 : i32
    %c0_i32_0 = arith.constant 0 : i32
    %c0_i32_1 = arith.constant 0 : i32
    return %c0_i32, %c0_i32_0 : i32, i32
  }
  func.func @transform_8(%arg0: i32, %arg1: i32) -> (i32, i32) {
    %c0_i32 = arith.constant 0 : i32
    %c0_i32_0 = arith.constant 0 : i32
    %c0_i32_1 = arith.constant 0 : i32
    return %c0_i32, %c0_i32_0 : i32, i32
  }
  func.func @transform_9(%arg0: i32, %arg1: i32) -> (i32, i32) {
    %c0_i32 = arith.constant 0 : i32
    %c0_i32_0 = arith.constant 0 : i32
    %c0_i32_1 = arith.constant 0 : i32
    return %c0_i32, %c0_i32_0 : i32, i32
  }
  func.func @transform_10(%arg0: i32, %arg1: i32) -> (i32, i32) {
    %c0_i32 = arith.constant 0 : i32
    %c0_i32_0 = arith.constant 0 : i32
    %c0_i32_1 = arith.constant 0 : i32
    return %c0_i32, %c0_i32_0 : i32, i32
  }
  func.func @transform_11(%arg0: i32, %arg1: i32) -> (i32, i32, i32) {
    %c0_i32 = arith.constant 0 : i32
    %c0_i32_0 = arith.constant 0 : i32
    return %arg1, %arg0, %c0_i32 : i32, i32, i32
  }
  func.func @transform_12(%arg0: i32, %arg1: i32) -> (i32, i32, i32) {
    %c0_i32 = arith.constant 0 : i32
    %c0_i32_0 = arith.constant 0 : i32
    return %arg1, %arg0, %c0_i32 : i32, i32, i32
  }
}

</mosaic_0001>

<bundles_post_ra>
// kernel: luong_decoder_forward.1
= control target key start
LH: loop header
LB: loop body
LE: loop exit
PB: predicated region body
PF: predicated region fallthrough
CT: control target
= control target key end

     0   :  { %s4356_s21 = smov 0   ;;  %s4358_s22 = smov 0   ;;  %s5530_s0 = inlined_call_operand.vmem [shape: bf16[8,128,128], index: 0, kind: input, shape index: {}]   ;;  %s5531_s1 = inlined_call_operand.vmem [shape: bf16[128,128], index: 1, kind: input, shape index: {}]   ;;  %s5532_s2 = inlined_call_operand.vmem [shape: bf16[128,512], index: 2, kind: input, shape index: {}]   ;;  %s5533_s3 = inlined_call_operand.vmem [shape: bf16[128,512], index: 3, kind: input, shape index: {}]   ;;  %s5534_s4 = inlined_call_operand.vmem [shape: f32[1,512], index: 4, kind: input, shape index: {}]   ;;  %s5535_s5 = inlined_call_operand.vmem [shape: bf16[128,128], index: 5, kind: input, shape index: {}]   ;;  %s5536_s6 = inlined_call_operand.vmem [shape: bf16[128,128], index: 6, kind: input, shape index: {}]   ;;  %s5537_s7 = inlined_call_operand.vmem [shape: bf16[128,128], index: 7, kind: input, shape index: {}]   ;;  %s5538_s8 = inlined_call_operand.vmem [shape: f32[1,128], index: 8, kind: input, shape index: {}]   ;;  %s5539_s9 = inlined_call_operand.vmem [shape: bf16[128,128], index: 9, kind: input, shape index: {}]   ;;  %s5540_s10 = inlined_call_operand.vmem [shape: f32[1,128], index: 10, kind: input, shape index: {}]   ;;  %s5541_s11 = inlined_call_operand.vmem [shape: f32[8,8,128], index: 11, kind: output, shape index: {0}]   ;;  %s5542_s12 = inlined_call_operand.vmem [shape: f32[8,8,128], index: 12, kind: output, shape index: {1}]  }
   0x1   :  { %s4360_s23 = smov 0  }
   0x2 LB: > { %s32_s24 = sadd.s32 1, %s4278_s22  ;;  %p3179_p0 = scmp.ge.s32.totalorder %s4282_s23, 1  ;;  %s4282_s23 = sphi %s4360_s23, %s23_s23   ;;  %s4278_s22 = sphi %s4358_s22, %s5580_s22   ;;  %s4274_s21 = sphi %s4356_s21, %s5579_s21  }
   0x3   : > { %p33_p1 = scmp.ge.s32.totalorder %s32_s24, 8  ;;  %p383_p2 = scmp.lt.s32.totalorder %s4282_s23, 9 }
   0x5   : > { %s5582_s24 = smov (%p33_p1, %s32_s24), 0  ;;  %p384_p3 = pnand %p3179_p0, %p383_p2 }
   0x7   : > { %387 = sbr.rel (%p384_p3) target bundleno = 2548 (0x9f4), region = 64 }
   0xc   : > { %p442_p4 = scmp.lt.s32.totalorder %s4274_s21, 7  ;;  %p3182_p5 = scmp.ne.s32.totalorder %s4274_s21, 0 }
   0xe   : > { %s443_s25 = scalar_select %p442_p4, %s4274_s21, 7 }
   0xf   : > { %460 = sbr.rel (%p3182_p5) target bundleno = 23 (0x17), region = 68 }
  0x10   : > { %s3180_s26 = sshll.u32 %s443_s25, 3 }
  0x11   : > { %s4377_s29 = scalar_lea.vmem %s5541_s11, %s3180_s26  ;;  %s4382_s14 = scalar_lea.vmem %s5542_s12, %s3180_s26 }
  0x14   : > { %vm463_vm0 = vcmask 7168   ;;  %v4284_v0 = vmov 0.0   ;;  %v4285_v1 = vmov 1  }
  0x15   : > { %461 = vst [vmem:[#allocation2] sm:$0xff] %v4284_v0  ;;  %462 = vst [vmem:[#allocation3] sm:$0xff] %v4284_v0 }
  0x16   : > { %464 = vst.msk [vmem:[#allocation4] sm:$0xff] %vm463_vm0, %v4285_v1 }
  0x17 PF: > { %v4006_v3 = vld [vmem:[%s5531_s1 + $0x38] sm:$0xff]   ;;  %v4286_v4 = vmov 0   ;;  %v4287_v5 = vmov 0.0   ;;  %v4007_v6 = vld [vmem:[%s5531_s1 + $0x30] sm:$0xff]   ;;  %v4008_v7 = vld [vmem:[%s5531_s1 + $0x28] sm:$0xff]   ;;  %vm4288_vm1 = vmmov 0   ;;  %v466_v48 = vlaneseq }
  0x18   : > { %4005 = vset.pattern.permute.xlu0 %v4286_v4  ;;  %3554 = vmatprep.subr.bf16.mxu0 %v4287_v5  ;;  %v4014_v8 = vld [vmem:[%s5533_s3 + $0xe4] ss:$16 sps:$4 sm:$0xff]   ;;  %v4016_v9 = vld [vmem:[%s5533_s3 + $0xe0] ss:$16 sps:$4 sm:$0xff]   ;;  %v4010_v14 = vld [vmem:[%s5531_s1 + $0x18] sm:$0xff]   ;;  %vm2213_vm5 = vcmask 1040384  }
  0x19   : > { %3555 = vmatpush3.bf16.msra.mxu0 %v4006_v3  ;;  %838 = vmatprep.mubr.bf16.mxu1 %v4286_v4  ;;  %v4009_v10 = vld [vmem:[%s5531_s1 + $0x20] sm:$0xff]   ;;  %v4011_v17 = vld [vmem:[%s5531_s1 + $0x10] sm:$0xff]   ;;  %v4012_v20 = vld [vmem:[%s5531_s1 + $0x8] sm:$0xff]   ;;  %v4525_v49 = vand.u32 127, %v466_v48  ;;  %v4289_v53 = vmov 1.0|1.0  }
  0x1a   : > { %3556 = vmatprep.subr.bf16.mxu0 %v4287_v5  ;;  %3570 = vmatprep.mubr.msk.bf16.mxu0 %vm4288_vm1, %v4287_v5  ;;  %v4017_v11 = vld [vmem:[%s5533_s3 + $0xc4] ss:$16 sps:$4 sm:$0xff]   ;;  %v4019_v12 = vld [vmem:[%s5533_s3 + $0xc0] ss:$16 sps:$4 sm:$0xff]   ;;  %v4022_v24 = vld [vmem:[%s5533_s3 + $0xec] ss:$16 sps:$4 sm:$0xff]  }
  0x1b   : > { %806 = vmatprep.subr.bf16.mxu1 %v4014_v8  ;;  %v4023_v13 = vld [vmem:[%s5533_s3 + $0xa4] ss:$16 sps:$4 sm:$0xff]   ;;  %v4025_v15 = vld [vmem:[%s5533_s3 + $0xa0] ss:$16 sps:$4 sm:$0xff]   ;;  %v4020_v51 = vld [vmem:[%s5533_s3 + $0xe8] ss:$16 sps:$4 sm:$0xff]  }
  0x1c   : > { %807 = vmatpush1.bf16.msra.mxu1 %v4016_v9  ;;  %v4029_v16 = vld [vmem:[%s5533_s3 + $0x84] ss:$16 sps:$4 sm:$0xff]   ;;  %v4031_v18 = vld [vmem:[%s5533_s3 + $0x80] ss:$16 sps:$4 sm:$0xff]   ;;  %v4028_v52 = vld [vmem:[%s5533_s3 + $0xcc] ss:$16 sps:$4 sm:$0xff]  }
  0x1d   : > { %v465_v2 = vld [vmem:[#allocation4] sm:$0xff]  ;;  %3557 = vmatpush3.bf16.msra.mxu0 %v4007_v6  ;;  %808 = vmatprep.subr.bf16.mxu1 %v4017_v11  ;;  %v4013_v23 = vld [vmem:[%s5531_s1] sm:$0xff]   ;;  %v4026_v54 = vld [vmem:[%s5533_s3 + $0xc8] ss:$16 sps:$4 sm:$0xff]   ;;  %vm2202_vm4 = vcmp.lt.s32.totalorder %v4525_v49, 8  ;;  %vm2311_vm6 = vcmask 1041409  }
  0x1e   : > { %469 = vperm.xlu0 %4005, %v465_v2   ;;  %3558 = vmatprep.subr.bf16.mxu0 %v4287_v5  ;;  %v4035_v19 = vld [vmem:[%s5533_s3 + $0x64] ss:$16 sps:$4 sm:$0xff]   ;;  %v4037_v21 = vld [vmem:[%s5533_s3 + $0x60] ss:$16 sps:$4 sm:$0xff]   ;;  %v4034_v55 = vld [vmem:[%s5533_s3 + $0xac] ss:$16 sps:$4 sm:$0xff]  }
  0x1f   : > { %v4041_v22 = vld [vmem:[%s5533_s3 + $0x44] ss:$16 sps:$4 sm:$0xff]   ;;  %v4043_v25 = vld [vmem:[%s5533_s3 + $0x40] ss:$16 sps:$4 sm:$0xff]   ;;  %v4032_v56 = vld [vmem:[%s5533_s3 + $0xa8] ss:$16 sps:$4 sm:$0xff]  }
  0x20   : > { %809 = vmatpush1.bf16.msra.mxu1 %v4019_v12  ;;  %v4047_v26 = vld [vmem:[%s5533_s3 + $0x24] ss:$16 sps:$4 sm:$0xff]   ;;  %v4049_v27 = vld [vmem:[%s5533_s3 + $0x20] ss:$16 sps:$4 sm:$0xff]   ;;  %v4040_v57 = vld [vmem:[%s5533_s3 + $0x8c] ss:$16 sps:$4 sm:$0xff]  }
  0x21   : > { %3559 = vmatpush3.bf16.msra.mxu0 %v4008_v7  ;;  %810 = vmatprep.subr.bf16.mxu1 %v4023_v13  ;;  %v4053_v28 = vld [vmem:[%s5533_s3 + $0x4] ss:$16 sps:$4 sm:$0xff]   ;;  %v4055_v29 = vld [vmem:[%s5533_s3] ss:$16 sps:$4 sm:$0xff]   ;;  %v4038_v58 = vld [vmem:[%s5533_s3 + $0x88] ss:$16 sps:$4 sm:$0xff]  }
  0x22   : > { %3560 = vmatprep.subr.bf16.mxu0 %v4287_v5  ;;  %v580_v30 = vld [vmem:[#allocation2] sm:$0xff]  ;;  %v4046_v59 = vld [vmem:[%s5533_s3 + $0x6c] ss:$16 sps:$4 sm:$0xff]   ;;  %v4044_v60 = vld [vmem:[%s5533_s3 + $0x68] ss:$16 sps:$4 sm:$0xff]   ;;  %vm2314_vm7 = vcmask 1042434  }
  0x23   : > { %v4064_v31 = vld [vmem:[%s5532_s2 + $0xe4] ss:$16 sps:$4 sm:$0xff]   ;;  %v4062_v32 = vld [vmem:[%s5532_s2 + $0xe0] ss:$16 sps:$4 sm:$0xff]   ;;  %v4477_v33 = vpack.c.bf16 %v580_v30, %v580_v30  ;;  %v4052_v61 = vld [vmem:[%s5533_s3 + $0x4c] ss:$16 sps:$4 sm:$0xff]  }
  0x24   : > { %811 = vmatpush1.bf16.msra.mxu1 %v4025_v15  ;;  %v4070_v34 = vld [vmem:[%s5532_s2 + $0xc4] ss:$16 sps:$4 sm:$0xff]   ;;  %v4068_v35 = vld [vmem:[%s5532_s2 + $0xc0] ss:$16 sps:$4 sm:$0xff]   ;;  %v4050_v62 = vld [vmem:[%s5533_s3 + $0x48] ss:$16 sps:$4 sm:$0xff]  }
  0x25   : > { %3561 = vmatpush3.bf16.msra.mxu0 %v4009_v10  ;;  %812 = vmatprep.subr.bf16.mxu1 %v4029_v16  ;;  %v4076_v36 = vld [vmem:[%s5532_s2 + $0xa4] ss:$16 sps:$4 sm:$0xff]   ;;  %v4074_v37 = vld [vmem:[%s5532_s2 + $0xa0] ss:$16 sps:$4 sm:$0xff]   ;;  %v4058_v63 = vld [vmem:[%s5533_s3 + $0x2c] ss:$16 sps:$4 sm:$0xff]  }
  0x26   : > { %3562 = vmatprep.subr.bf16.mxu0 %v4287_v5  ;;  %v4082_v38 = vld [vmem:[%s5532_s2 + $0x84] ss:$16 sps:$4 sm:$0xff]   ;;  %v4080_v39 = vld [vmem:[%s5532_s2 + $0x80] ss:$16 sps:$4 sm:$0xff]   ;;  %v4056_v0 = vld [vmem:[%s5533_s3 + $0x28] ss:$16 sps:$4 sm:$0xff]  }
  0x27   : > { %v4088_v40 = vld [vmem:[%s5532_s2 + $0x64] ss:$16 sps:$4 sm:$0xff]   ;;  %v4086_v41 = vld [vmem:[%s5532_s2 + $0x60] ss:$16 sps:$4 sm:$0xff]   ;;  %v4061_v1 = vld [vmem:[%s5533_s3 + $0xc] ss:$16 sps:$4 sm:$0xff]  }
  0x28   : > { %813 = vmatpush1.bf16.msra.mxu1 %v4031_v18  ;;  %v4094_v42 = vld [vmem:[%s5532_s2 + $0x44] ss:$16 sps:$4 sm:$0xff]   ;;  %v4092_v43 = vld [vmem:[%s5532_s2 + $0x40] ss:$16 sps:$4 sm:$0xff]   ;;  %v4059_v2 = vld [vmem:[%s5533_s3 + $0x8] ss:$16 sps:$4 sm:$0xff]  }
  0x29   : > { %3563 = vmatpush3.bf16.msra.mxu0 %v4010_v14  ;;  %814 = vmatprep.subr.bf16.mxu1 %v4035_v19  ;;  %v4100_v44 = vld [vmem:[%s5532_s2 + $0x24] ss:$16 sps:$4 sm:$0xff]   ;;  %v4098_v45 = vld [vmem:[%s5532_s2 + $0x20] ss:$16 sps:$4 sm:$0xff]   ;;  %v4067_v3 = vld [vmem:[%s5532_s2 + $0xec] ss:$16 sps:$4 sm:$0xff]  }
  0x2a   : > { %3564 = vmatprep.subr.bf16.mxu0 %v4287_v5  ;;  %v4106_v46 = vld [vmem:[%s5532_s2 + $0x4] ss:$16 sps:$4 sm:$0xff]   ;;  %v4104_v47 = vld [vmem:[%s5532_s2] ss:$16 sps:$4 sm:$0xff]   ;;  %v4065_v6 = vld [vmem:[%s5532_s2 + $0xe8] ss:$16 sps:$4 sm:$0xff]  }
  0x2b   : > { %v4073_v7 = vld [vmem:[%s5532_s2 + $0xcc] ss:$16 sps:$4 sm:$0xff]   ;;  %v4071_v8 = vld [vmem:[%s5532_s2 + $0xc8] ss:$16 sps:$4 sm:$0xff]   ;;  %vm2317_vm8 = vcmask 1043459   ;;  %vm2320_vm9 = vcmask 1044484  }
  0x2c   : > { %815 = vmatpush1.bf16.msra.mxu1 %v4037_v21  ;;  %v4079_v9 = vld [vmem:[%s5532_s2 + $0xac] ss:$16 sps:$4 sm:$0xff]   ;;  %v4077_v10 = vld [vmem:[%s5532_s2 + $0xa8] ss:$16 sps:$4 sm:$0xff]   ;;  %vm2323_vm10 = vcmask 1045509   ;;  %vm2326_vm11 = vcmask 1046534  }
  0x2d   : > { %3565 = vmatpush3.bf16.msra.mxu0 %v4011_v17  ;;  %816 = vmatprep.subr.bf16.mxu1 %v4041_v22  ;;  %v4085_v11 = vld [vmem:[%s5532_s2 + $0x8c] ss:$16 sps:$4 sm:$0xff]   ;;  %v4089_v13 = vld [vmem:[%s5532_s2 + $0x68] ss:$16 sps:$4 sm:$0xff]   ;;  %vm2329_vm12 = vcmask 1047559   ;;  %vm3057_vm15 = vcmask 7168  }
  0x2e   : > { %3566 = vmatprep.subr.bf16.mxu0 %v4287_v5  ;;  %v4091_v12 = vld [vmem:[%s5532_s2 + $0x6c] ss:$16 sps:$4 sm:$0xff]   ;;  %v4095_v15 = vld [vmem:[%s5532_s2 + $0x48] ss:$16 sps:$4 sm:$0xff]  }
  0x2f   : > { %v4097_v14 = vld [vmem:[%s5532_s2 + $0x4c] ss:$16 sps:$4 sm:$0xff]   ;;  %v4101_v17 = vld [vmem:[%s5532_s2 + $0x28] ss:$16 sps:$4 sm:$0xff]  }
  0x30   : > { %817 = vmatpush1.bf16.msra.mxu1 %v4043_v25  ;;  %v4103_v16 = vld [vmem:[%s5532_s2 + $0x2c] ss:$16 sps:$4 sm:$0xff]   ;;  %v4107_v19 = vld [vmem:[%s5532_s2 + $0x8] ss:$16 sps:$4 sm:$0xff]  }
  0x31   : > { %3567 = vmatpush3.bf16.msra.mxu0 %v4012_v20  ;;  %818 = vmatprep.subr.bf16.mxu1 %v4047_v26  ;;  %v4109_v18 = vld [vmem:[%s5532_s2 + $0xc] ss:$16 sps:$4 sm:$0xff]  }
  0x32   : > { %3568 = vmatprep.subr.bf16.mxu0 %v4287_v5 }
  0x34   : > { %819 = vmatpush1.bf16.msra.mxu1 %v4049_v27 }
  0x35   : > { %3569 = vmatpush3.bf16.msra.mxu0 %v4013_v23  ;;  %820 = vmatprep.subr.bf16.mxu1 %v4053_v28 }
  0x36   : > { %847 = vmatprep.subr.bf16.mxu0 %v4022_v24 }
  0x38   : > { %821 = vmatpush1.bf16.msra.mxu1 %v4055_v29 }
  0x39   : > { %1048 = vmatprep.subr.bf16.mxu1 %v4064_v31 }
  0x3b   : > { %839 = vmatmul.mubr.bf16.vlgmr.msra.gmra.mxu1 %v4477_v33 }
  0x3c   : > { %1049 = vmatpush1.bf16.msra.mxu1 %v4062_v32  ;;  %1080 = vmatprep.mubr.bf16.mxu1 %v4286_v4 }
  0x3d   : > { %1050 = vmatprep.subr.bf16.mxu1 %v4070_v34  ;;  %v4111_v34 = vld [vmem:[%s5535_s5 + $0x30] sm:$0xff]  }
  0x40   : > { %1051 = vmatpush1.bf16.msra.mxu1 %v4068_v35  ;;  %v4112_v35 = vld [vmem:[%s5535_s5 + $0x28] sm:$0xff]  }
  0x41   : > { %1052 = vmatprep.subr.bf16.mxu1 %v4076_v36  ;;  %v4113_v36 = vld [vmem:[%s5535_s5 + $0x20] sm:$0xff]  }
  0x44   : > { %1053 = vmatpush1.bf16.msra.mxu1 %v4074_v37  ;;  %v4114_v37 = vld [vmem:[%s5535_s5 + $0x18] sm:$0xff]  }
  0x45   : > { %1054 = vmatprep.subr.bf16.mxu1 %v4082_v38  ;;  %v4115_v38 = vld [vmem:[%s5535_s5 + $0x10] sm:$0xff]  }
  0x48   : > { %1055 = vmatpush1.bf16.msra.mxu1 %v4080_v39  ;;  %v4116_v39 = vld [vmem:[%s5535_s5 + $0x8] sm:$0xff]  }
  0x49   : > { %1056 = vmatprep.subr.bf16.mxu1 %v4088_v40  ;;  %v4117_v40 = vld [vmem:[%s5535_s5] sm:$0xff]  }
  0x4c   : > { %1057 = vmatpush1.bf16.msra.mxu1 %v4086_v41  ;;  %v4676_v41 = vld [vmem:[%s5530_s0 + $0x38] sm:$0xff]  }
  0x4d   : > { %1058 = vmatprep.subr.bf16.mxu1 %v4094_v42  ;;  %v4683_v42 = vld [vmem:[%s5530_s0 + $0x30] sm:$0xff]  }
  0x50   : > { %1059 = vmatpush1.bf16.msra.mxu1 %v4092_v43  ;;  %v4690_v43 = vld [vmem:[%s5530_s0 + $0x28] sm:$0xff]  }
  0x51   : > { %1060 = vmatprep.subr.bf16.mxu1 %v4100_v44  ;;  %v4697_v44 = vld [vmem:[%s5530_s0 + $0x20] sm:$0xff]  }
  0x54   : > { %1061 = vmatpush1.bf16.msra.mxu1 %v4098_v45  ;;  %v4704_v45 = vld [vmem:[%s5530_s0 + $0x18] sm:$0xff]  }
  0x55   : > { %1062 = vmatprep.subr.bf16.mxu1 %v4106_v46  ;;  %v4711_v46 = vld [vmem:[%s5530_s0 + $0x10] sm:$0xff]  }
  0x58   : > { %1063 = vmatpush1.bf16.msra.mxu1 %v4104_v47  ;;  %v4718_v47 = vld [vmem:[%s5530_s0 + $0x8] sm:$0xff]  }
  0x59   : > { %3574 = vmatprep.subr.bf16.mxu1 %v4287_v5 }
  0x99   : > { %v470_v50 = vpop.permute.xlu0 %469 }
  0x9a   : > { %vm471_vm2 = vcmp.eq.s32.totalorder %v4525_v49, %v470_v50  ;;  %v4723_v50 = vshrl.u32 %v466_v48, 7 }
  0x9b   : > { %vm3192_vm3 = vmpackc.low %vm471_vm2, %vm471_vm2 }
  0x9c   : > { %3571 = vmatmul.mubr.msk.bf16.vlgmr.msra.gmra.mxu0 %vm3192_vm3, %v4289_v53  ;;  %v1138_v53 = vsub.s32 1, %v4723_v50 }
  0x9d   : > { %848 = vmatpush1.bf16.msra.mxu0 %v4020_v51  ;;  %879 = vmatprep.mubr.bf16.mxu0 %v4286_v4  ;;  %v4726_v51 = vsub.s32 0, %v4723_v50 }
  0x9e   : > { %849 = vmatprep.subr.bf16.mxu0 %v4028_v52  ;;  %v1130_v52 = vld [vmem:[%s5534_s4] sm:$0xf] }
  0xa1   : > { %850 = vmatpush1.bf16.msra.mxu0 %v4026_v54  ;;  %v1135_v54 = vrot.slane %v1130_v52, %v4726_v51 }
  0xa2   : > { %851 = vmatprep.subr.bf16.mxu0 %v4034_v55 }
  0xa5   : > { %852 = vmatpush1.bf16.msra.mxu0 %v4032_v56 }
  0xa6   : > { %853 = vmatprep.subr.bf16.mxu0 %v4040_v57 }
  0xa9   : > { %854 = vmatpush1.bf16.msra.mxu0 %v4038_v58  ;;  %v1139_v58 = vrot.slane %v1130_v52, %v1138_v53  ;;  %v4290_v53 = vmov 1966171168  }
  0xaa   : > { %855 = vmatprep.subr.bf16.mxu0 %v4046_v59 }
  0xad   : > { %856 = vmatpush1.bf16.msra.mxu0 %v4044_v60 }
  0xae   : > { %857 = vmatprep.subr.bf16.mxu0 %v4052_v61 }
  0xb1   : > { %858 = vmatpush1.bf16.msra.mxu0 %v4050_v62 }
  0xb2   : > { %859 = vmatprep.subr.bf16.mxu0 %v4058_v63 }
  0xb5   : > { %860 = vmatpush1.bf16.msra.mxu0 %v4056_v0 }
  0xb6   : > { %861 = vmatprep.subr.bf16.mxu0 %v4061_v1 }
  0xb9   : > { %862 = vmatpush1.bf16.msra.mxu0 %v4059_v2  ;;  %v1146_v2 = vsub.s32 3, %v4723_v50 }
  0xba   : > { %1089 = vmatprep.subr.bf16.mxu0 %v4067_v3 }
  0xbc   : > { %880 = vmatmul.mubr.bf16.vlgmr.msra.gmra.mxu0 %v4477_v33  ;;  %v4110_v33 = vld [vmem:[%s5535_s5 + $0x38] sm:$0xff]  }
  0xbd   : > { %1090 = vmatpush1.bf16.msra.mxu0 %v4065_v6  ;;  %1121 = vmatprep.mubr.bf16.mxu0 %v4286_v4  ;;  %v4083_v4 = vld [vmem:[%s5532_s2 + $0x88] ss:$16 sps:$4 sm:$0xff]  }
  0xbe   : > { %1091 = vmatprep.subr.bf16.mxu0 %v4073_v7 }
  0xc1   : > { %1092 = vmatpush1.bf16.msra.mxu0 %v4071_v8 }
  0xc2   : > { %1093 = vmatprep.subr.bf16.mxu0 %v4079_v9  ;;  %v1147_v9 = vrot.slane %v1130_v52, %v1146_v2 }
  0xc5   : > { %1094 = vmatpush1.bf16.msra.mxu0 %v4077_v10  ;;  %v1142_v10 = vsub.s32 2, %v4723_v50 }
  0xc6   : > { %1095 = vmatprep.subr.bf16.mxu0 %v4085_v11 }
  0xc9   : > { %1096 = vmatpush1.bf16.msra.mxu0 %v4083_v4 }
  0xca   : > { %1097 = vmatprep.subr.bf16.mxu0 %v4091_v12  ;;  %v1143_v12 = vrot.slane %v1130_v52, %v1142_v10  ;;  %v4799_v52 = vld [vmem:[%s5530_s0 + $0x40] sm:$0xff]   ;;  %v4852_v10 = vld [vmem:[%s5530_s0 + $0xe8] sm:$0xff]  }
  0xcd   : > { %1098 = vmatpush1.bf16.msra.mxu0 %v4089_v13 }
  0xce   : > { %1099 = vmatprep.subr.bf16.mxu0 %v4097_v14 }
  0xd1   : > { %1100 = vmatpush1.bf16.msra.mxu0 %v4095_v15 }
  0xd2   : > { %1101 = vmatprep.subr.bf16.mxu0 %v4103_v16 }
  0xd5   : > { %1102 = vmatpush1.bf16.msra.mxu0 %v4101_v17 }
  0xd6   : > { %1103 = vmatprep.subr.bf16.mxu0 %v4109_v18 }
  0xd9   : > { %1104 = vmatpush1.bf16.msra.mxu0 %v4107_v19 }
  0xda   : > { %3594 = vmatprep.subr.bf16.mxu0 %v4287_v5 }
  0xfb   : > { %v4625_v20 = vpop.f32.mrf.mxu1 }
  0xfd   : > { %v4627_v21 = vpop.f32.mrf.mxu1 }
  0xff   : > { %v844_v22 = vpop.f32.mrf.mxu1 }
 0x101   : > { %v845_v23 = vpop.f32.mrf.mxu1 }
 0x15c   : > { %v573_v24 = vpop.f32.mrf.mxu0 }
 0x15d   : > { %v4629_v25 = vpack.c.bf16 %v573_v24, %v573_v24 }
 0x15e   : > { %v3572_v26 = vpop.f32.mrf.mxu0 }
 0x15f   : > { %5555 = vst [vmem:[#allocation5_spill] sm:$0xff] %v4629_v25  ;;  %1081 = vmatmul.mubr.bf16.vlgmr.msra.gmra.mxu1 %v4629_v25  ;;  %1122 = vmatmul.mubr.bf16.vlgmr.msra.gmra.mxu0 %v4629_v25  ;;  %v5137_v25 = vld [vmem:[%s5530_s0 + $0x1d0] sm:$0xff]  }
 0x160   : > { %v576_v27 = vpop.f32.mrf.mxu0  ;;  %3590 = vmatprep.mubr.msk.bf16.mxu1 %vm4288_vm1, %v4287_v5  ;;  %3610 = vmatprep.mubr.msk.bf16.mxu0 %vm4288_vm1, %v4287_v5  ;;  %5563 = vst [vmem:[#allocation13_spill] sm:$0xff] %v5137_v25 }
 0x161   : > { %3575 = vmatpush3.bf16.msra.mxu1 %v4110_v33  ;;  %3595 = vmatpush3.bf16.xpose.msra.mxu0 %v4676_v41 }
 0x162   : > { %v3573_v28 = vpop.f32.mrf.mxu0  ;;  %3576 = vmatprep.subr.bf16.mxu1 %v4287_v5  ;;  %3596 = vmatprep.subr.bf16.mxu0 %v4287_v5 }
 0x165   : > { %3577 = vmatpush3.bf16.msra.mxu1 %v4111_v34  ;;  %v4751_v34 = vld [vmem:[%s5530_s0 + $0x70] sm:$0xff]  }
 0x166   : > { %3578 = vmatprep.subr.bf16.mxu1 %v4287_v5 }
 0x169   : > { %3579 = vmatpush3.bf16.msra.mxu1 %v4112_v35  ;;  %3597 = vmatpush3.bf16.xpose.msra.mxu0 %v4683_v42  ;;  %v4758_v35 = vld [vmem:[%s5530_s0 + $0x68] sm:$0xff]  }
 0x16a   : > { %3580 = vmatprep.subr.bf16.mxu1 %v4287_v5  ;;  %3598 = vmatprep.subr.bf16.mxu0 %v4287_v5 }
 0x16d   : > { %3581 = vmatpush3.bf16.msra.mxu1 %v4113_v36  ;;  %v4765_v36 = vld [vmem:[%s5530_s0 + $0x60] sm:$0xff]  }
 0x16e   : > { %3582 = vmatprep.subr.bf16.mxu1 %v4287_v5 }
 0x171   : > { %3583 = vmatpush3.bf16.msra.mxu1 %v4114_v37  ;;  %3599 = vmatpush3.bf16.xpose.msra.mxu0 %v4690_v43  ;;  %v4772_v37 = vld [vmem:[%s5530_s0 + $0x58] sm:$0xff]  }
 0x172   : > { %3584 = vmatprep.subr.bf16.mxu1 %v4287_v5  ;;  %3600 = vmatprep.subr.bf16.mxu0 %v4287_v5 }
 0x175   : > { %3585 = vmatpush3.bf16.msra.mxu1 %v4115_v38  ;;  %v4779_v38 = vld [vmem:[%s5530_s0 + $0x50] sm:$0xff]  }
 0x176   : > { %3586 = vmatprep.subr.bf16.mxu1 %v4287_v5 }
 0x179   : > { %3587 = vmatpush3.bf16.msra.mxu1 %v4116_v39  ;;  %3601 = vmatpush3.bf16.xpose.msra.mxu0 %v4697_v44  ;;  %v4786_v39 = vld [vmem:[%s5530_s0 + $0x48] sm:$0xff]  }
 0x17a   : > { %3588 = vmatprep.subr.bf16.mxu1 %v4287_v5  ;;  %3602 = vmatprep.subr.bf16.mxu0 %v4287_v5 }
 0x17c   : > { %v4637_v29 = vpop.f32.mrf.mxu0 }
 0x17d   : > { %3589 = vmatpush3.bf16.msra.mxu1 %v4117_v40  ;;  %v4793_v40 = vld [vmem:[%s5530_s0] sm:$0xff]  }
 0x17e   : > { %v4639_v30 = vpop.f32.mrf.mxu0  ;;  %3614 = vmatprep.subr.bf16.mxu1 %v4287_v5 }
 0x180   : > { %v885_v31 = vpop.f32.mrf.mxu0 }
 0x181   : > { %3603 = vmatpush3.bf16.xpose.msra.mxu0 %v4704_v45 }
 0x182   : > { %v886_v32 = vpop.f32.mrf.mxu0  ;;  %3604 = vmatprep.subr.bf16.mxu0 %v4287_v5 }
 0x183   : > { %v4742_v32 = vld [vmem:[%s5530_s0 + $0x78] sm:$0xff]  }
 0x189   : > { %3605 = vmatpush3.bf16.xpose.msra.mxu0 %v4711_v46 }
 0x18a   : > { %3606 = vmatprep.subr.bf16.mxu0 %v4287_v5 }
 0x191   : > { %3607 = vmatpush3.bf16.xpose.msra.mxu0 %v4718_v47 }
 0x192   : > { %3608 = vmatprep.subr.bf16.mxu0 %v4287_v5 }
 0x199   : > { %3609 = vmatpush3.bf16.xpose.msra.mxu0 %v4793_v40 }
 0x19a   : > { %3634 = vmatprep.subr.bf16.mxu0 %v4287_v5 }
 0x21f   : > { %v1082_v55 = vpop.f32.mrf.mxu1  ;;  %v1123_v56 = vpop.f32.mrf.mxu0 }
 0x220   : > { %v1083_v57 = vadd.f32 %v1082_v55, %v4625_v20  ;;  %v1124_v4 = vadd.f32 %v1123_v56, %v4637_v29 }
 0x221   : > { %v1084_v59 = vpop.f32.mrf.mxu1  ;;  %v1125_v60 = vpop.f32.mrf.mxu0 }
 0x222   : > { %v1152_v48 = vadd.f32 %v1135_v54, %v1083_v57  ;;  %v1085_v61 = vadd.f32 %v1084_v59, %v4627_v21  ;;  %v1126_v8 = vadd.f32 %v1125_v60, %v4639_v30  ;;  %v1154_v15 = vadd.f32 %v1143_v12, %v1124_v4  ;;  %v1175_v21 = vld [vmem:[#allocation3] sm:$0xff]  ;;  %v4866_v4 = vld [vmem:[%s5530_s0 + $0xe0] sm:$0xff]   ;;  %v4875_v12 = vld [vmem:[%s5530_s0 + $0x98] sm:$0xff]  }
 0x223   : > { %v1086_v62 = vpop.f32.mrf.mxu1  ;;  %v1127_v63 = vpop.f32.mrf.mxu0  ;;  %v1419_v54 = vunpack.c.l.s4 %v4290_v53  ;;  %v4975_v53 = vld [vmem:[%s5530_s0 + $0x168] sm:$0xff]  }
 0x224   : > { %v3258_v0 = vmul.f32 -1.442695, %v1152_v48  ;;  %v1153_v1 = vadd.f32 %v1139_v58, %v1085_v61  ;;  %v1155_v11 = vadd.f32 %v1147_v9, %v1126_v8  ;;  %v4838_v8 = vld [vmem:[%s5530_s0 + $0xf0] sm:$0xff]   ;;  %v4847_v9 = vld [vmem:[%s5530_s0 + $0xa8] sm:$0xff]  }
 0x225   : > { %v1087_v3 = vpop.f32.mrf.mxu1  ;;  %v1128_v6 = vpop.f32.mrf.mxu0  ;;  %v1420_v55 = vunpack.c.0.s8 %v1419_v54  ;;  %v4984_v54 = vld [vmem:[%s5530_s0 + $0x120] sm:$0xff]  }
 0x226   : > { %4206 = vpow2.f32 %v3258_v0  ;;  %v3259_v7 = vmul.f32 -1.442695, %v1153_v1  ;;  %v3260_v13 = vmul.f32 -1.442695, %v1155_v11  ;;  %v4813_v1 = vld [vmem:[%s5530_s0 + $0xb8] sm:$0xff]   ;;  %v4861_v11 = vld [vmem:[%s5530_s0 + $0xa0] sm:$0xff]  }
 0x227   : > { %v1423_v56 = vsub.s32 %v1420_v55, %v4723_v50  ;;  %v4819_v3 = vld [vmem:[%s5530_s0 + $0xf8] sm:$0xff]   ;;  %v4989_v55 = vld [vmem:[%s5530_s0 + $0x160] sm:$0xff]  }
 0x228   : > { %4208 = vpow2.f32 %v3259_v7  ;;  %v4833_v7 = vld [vmem:[%s5530_s0 + $0xb0] sm:$0xff]  }
 0x229   : > { %4210 = vpow2.f32 %v3260_v13  ;;  %v4880_v13 = vld [vmem:[%s5530_s0 + $0xd8] sm:$0xff]  }
 0x233   : > { %v4207_v14 = vpop.eup %4206 }
 0x234   : > { %v1159_v16 = vadd.f32 1.0, %v4207_v14  ;;  %v4889_v14 = vld [vmem:[%s5530_s0 + $0x90] sm:$0xff]  }
 0x235   : > { %v4209_v17 = vpop.eup %4208 }
 0x236   : > { %4212 = vrcp.f32 %v1159_v16  ;;  %v1165_v18 = vadd.f32 1.0, %v4209_v17  ;;  %v4211_v19 = vpop.eup %4210  ;;  %v4903_v16 = vld [vmem:[%s5530_s0 + $0x88] sm:$0xff]  }
 0x237   : > { %4214 = vtanh.f32 %v1154_v15  ;;  %v1172_v24 = vadd.f32 1.0, %v4211_v19  ;;  %v4894_v15 = vld [vmem:[%s5530_s0 + $0xd0] sm:$0xff]   ;;  %v4908_v17 = vld [vmem:[%s5530_s0 + $0xc8] sm:$0xff]  }
 0x238   : > { %4216 = vrcp.f32 %v1165_v18 }
 0x239   : > { %4218 = vrcp.f32 %v1172_v24 }
 0x243   : > { %v4213_v20 = vpop.eup %4212 }
 0x244   : > { %v4215_v22 = vpop.eup %4214 }
 0x245   : > { %v4217_v23 = vpop.eup %4216  ;;  %v1177_v26 = vmul.f32 %v4215_v22, %v4213_v20  ;;  %v4919_v20 = vld [vmem:[%s5530_s0 + $0x80] sm:$0xff]  }
 0x246   : > { %v1176_v27 = vmul.f32 %v4217_v23, %v1175_v21  ;;  %v4219_v29 = vpop.eup %4218  ;;  %v4924_v21 = vld [vmem:[%s5530_s0 + $0xc0] sm:$0xff]  }
 0x248   : > { %v1178_v28 = vadd.f32 %v1177_v26, %v1176_v27  ;;  %v4936_v26 = vld [vmem:[%s5530_s0 + $0x138] sm:$0xff]  }
 0x24a   : > { %1182 = vst [vmem:[#allocation3] sm:$0xff] %v1178_v28  ;;  %4220 = vtanh.f32 %v1178_v28  ;;  %v4942_v28 = vld [vmem:[%s5530_s0 + $0x178] sm:$0xff]  }
 0x257   : > { %v4221_v30 = vpop.eup %4220 }
 0x258   : > { %v1180_v31 = vmul.f32 %v4221_v30, %v4219_v29  ;;  %v4956_v30 = vld [vmem:[%s5530_s0 + $0x130] sm:$0xff]  }
 0x25a   : > { %1181 = vst [vmem:[#allocation2] sm:$0xff] %v1180_v31  ;;  %v1311_v33 = vpack.c.bf16 %v1180_v31, %v1180_v31  ;;  %v4961_v31 = vld [vmem:[%s5530_s0 + $0x170] sm:$0xff]  }
 0x25c   : > { %3591 = vmatmul.mubr.bf16.vlgmr.msra.gmra.mxu1 %v1311_v33  ;;  %v4970_v33 = vld [vmem:[%s5530_s0 + $0x128] sm:$0xff]  }
 0x25d   : > { %3615 = vmatpush3.bf16.xpose.msra.mxu1 %v4742_v32  ;;  %3630 = vmatprep.mubr.msk.bf16.mxu1 %vm4288_vm1, %v4287_v5 }
 0x25e   : > { %3616 = vmatprep.subr.bf16.mxu1 %v4287_v5 }
 0x265   : > { %3617 = vmatpush3.bf16.xpose.msra.mxu1 %v4751_v34 }
 0x266   : > { %3618 = vmatprep.subr.bf16.mxu1 %v4287_v5 }
 0x26d   : > { %3619 = vmatpush3.bf16.xpose.msra.mxu1 %v4758_v35 }
 0x26e   : > { %3620 = vmatprep.subr.bf16.mxu1 %v4287_v5 }
 0x275   : > { %3621 = vmatpush3.bf16.xpose.msra.mxu1 %v4765_v36 }
 0x276   : > { %3622 = vmatprep.subr.bf16.mxu1 %v4287_v5 }
 0x27d   : > { %3623 = vmatpush3.bf16.xpose.msra.mxu1 %v4772_v37 }
 0x27e   : > { %3624 = vmatprep.subr.bf16.mxu1 %v4287_v5 }
 0x285   : > { %3625 = vmatpush3.bf16.xpose.msra.mxu1 %v4779_v38 }
 0x286   : > { %3626 = vmatprep.subr.bf16.mxu1 %v4287_v5 }
 0x28d   : > { %3627 = vmatpush3.bf16.xpose.msra.mxu1 %v4786_v39 }
 0x28e   : > { %3628 = vmatprep.subr.bf16.mxu1 %v4287_v5 }
 0x295   : > { %3629 = vmatpush3.bf16.xpose.msra.mxu1 %v4799_v52 }
 0x296   : > { %3654 = vmatprep.subr.bf16.mxu1 %v4287_v5 }
 0x31c   : > { %v1410_v57 = vpop.f32.mrf.mxu1 }
 0x31d   : > { %v1416_v58 = vpack.c.bf16 %v1410_v57, %v1410_v57  ;;  %v5003_v57 = vld [vmem:[%s5530_s0 + $0x158] sm:$0xff]  }
 0x31e   : > { %v3592_v59 = vpop.f32.mrf.mxu1 }
 0x31f   : > { %v1424_v60 = vrot.slane %v1416_v58, %v1423_v56  ;;  %v5012_v58 = vld [vmem:[%s5530_s0 + $0x110] sm:$0xff]  }
 0x320   : > { %v1413_v48 = vpop.f32.mrf.mxu1  ;;  %v5017_v59 = vld [vmem:[%s5530_s0 + $0x150] sm:$0xff]  }
 0x321   : > { %v4805_v61 = vrot.slane %v1424_v60, %v1423_v56  ;;  %v1425_v18 = vcombine.high %v1424_v60, %v1424_v60  ;;  %v5026_v60 = vld [vmem:[%s5530_s0 + $0x108] sm:$0xff]  }
 0x322   : > { %v3593_v62 = vpop.f32.mrf.mxu1  ;;  %v5031_v48 = vld [vmem:[%s5530_s0 + $0x148] sm:$0xff]  }
 0x323   : > { %v1443_v63 = vunpack.i.h.s16 %v4805_v61  ;;  %v3269_v0 = vpack.i.b16 %v4805_v61, %v4805_v61  ;;  %v4913_v19 = vrot.slane %v1425_v18, %v1423_v56  ;;  %v4998_v56 = vld [vmem:[%s5530_s0 + $0x118] sm:$0xff]   ;;  %v1440_v62 = vcombine.high %v4805_v61, %v4805_v61 }
 0x325   : > { %v1454_v50 = vrot.slane %v3269_v0, %v4726_v51  ;;  %v1544_v2 = vpack.i.b16 %v1443_v63, %v1443_v63  ;;  %v1445_v22 = vunpack.i.h.s16 %v4913_v19  ;;  %v3286_v23 = vpack.i.b16 %v4913_v19, %v4913_v19  ;;  %v5042_v63 = vld [vmem:[%s5530_s0 + $0x100] sm:$0xff]  }
 0x326   : > { %v5047_v0 = vld [vmem:[%s5530_s0 + $0x140] sm:$0xff]  }
 0x327   : > { %3611 = vmatmul.mubr.bf16.vlgmr.msra.gmra.mxu0 %v1454_v50  ;;  %v1548_v6 = vrot.slane %v1544_v2, %v4726_v51  ;;  %v1732_v24 = vpack.i.b16 %v1445_v22, %v1445_v22  ;;  %v1642_v27 = vrot.slane %v3286_v23, %v4726_v51  ;;  %v1447_v50 = vunpack.i.h.s16 %v1440_v62  ;;  %v5062_v22 = vld [vmem:[%s5530_s0 + $0x1f8] sm:$0xff]  }
 0x328   : > { %3635 = vmatpush3.bf16.xpose.msra.mxu0 %v4813_v1  ;;  %3650 = vmatprep.mubr.msk.bf16.mxu0 %vm4288_vm1, %v4287_v5  ;;  %v3303_v2 = vpack.i.b16 %v1440_v62, %v1440_v62  ;;  %v5095_v62 = vld [vmem:[%s5530_s0 + $0x1e8] sm:$0xff]  }
 0x329   : > { %3631 = vmatmul.mubr.bf16.vlgmr.msra.gmra.mxu1 %v1548_v6  ;;  %3636 = vmatprep.subr.bf16.mxu0 %v4287_v5  ;;  %v1736_v29 = vrot.slane %v1732_v24, %v4726_v51  ;;  %v1920_v61 = vpack.i.b16 %v1447_v50, %v1447_v50  ;;  %v5056_v6 = vld [vmem:[%s5530_s0 + $0x1b8] sm:$0xff]   ;;  %v5076_v24 = vld [vmem:[%s5530_s0 + $0x1b0] sm:$0xff]   ;;  %5557 = vst [vmem:[#allocation7_spill] sm:$0xff] %v5095_v62  ;;  %v5104_v50 = vld [vmem:[%s5530_s0 + $0x1a0] sm:$0xff]  }
 0x32a   : > { %3655 = vmatpush3.bf16.xpose.msra.mxu1 %v4819_v3  ;;  %3670 = vmatprep.mubr.msk.bf16.mxu1 %vm4288_vm1, %v4287_v5  ;;  %v1830_v18 = vrot.slane %v3303_v2, %v4726_v51  ;;  %5558 = vst [vmem:[#allocation8_spill] sm:$0xff] %v5104_v50  ;;  %v5109_v2 = vld [vmem:[%s5530_s0 + $0x1e0] sm:$0xff]  }
 0x32b   : > { %3656 = vmatprep.subr.bf16.mxu1 %v4287_v5  ;;  %v1924_v23 = vrot.slane %v1920_v61, %v4726_v51  ;;  %5559 = vst [vmem:[#allocation9_spill] sm:$0xff] %v5109_v2  ;;  %v5118_v61 = vld [vmem:[%s5530_s0 + $0x198] sm:$0xff]  }
 0x32c   : > { %5560 = vst [vmem:[#allocation10_spill] sm:$0xff] %v5118_v61 }
 0x330   : > { %3637 = vmatpush3.bf16.xpose.msra.mxu0 %v4833_v7 }
 0x331   : > { %3638 = vmatprep.subr.bf16.mxu0 %v4287_v5 }
 0x332   : > { %3657 = vmatpush3.bf16.xpose.msra.mxu1 %v4838_v8 }
 0x333   : > { %3658 = vmatprep.subr.bf16.mxu1 %v4287_v5 }
 0x338   : > { %3639 = vmatpush3.bf16.xpose.msra.mxu0 %v4847_v9 }
 0x339   : > { %3640 = vmatprep.subr.bf16.mxu0 %v4287_v5 }
 0x33a   : > { %3659 = vmatpush3.bf16.xpose.msra.mxu1 %v4852_v10 }
 0x33b   : > { %3660 = vmatprep.subr.bf16.mxu1 %v4287_v5 }
 0x340   : > { %3641 = vmatpush3.bf16.xpose.msra.mxu0 %v4861_v11 }
 0x341   : > { %3642 = vmatprep.subr.bf16.mxu0 %v4287_v5 }
 0x342   : > { %3661 = vmatpush3.bf16.xpose.msra.mxu1 %v4866_v4 }
 0x343   : > { %3662 = vmatprep.subr.bf16.mxu1 %v4287_v5 }
 0x348   : > { %3643 = vmatpush3.bf16.xpose.msra.mxu0 %v4875_v12 }
 0x349   : > { %3644 = vmatprep.subr.bf16.mxu0 %v4287_v5 }
 0x34a   : > { %3663 = vmatpush3.bf16.xpose.msra.mxu1 %v4880_v13 }
 0x34b   : > { %3664 = vmatprep.subr.bf16.mxu1 %v4287_v5 }
 0x350   : > { %3645 = vmatpush3.bf16.xpose.msra.mxu0 %v4889_v14 }
 0x351   : > { %3646 = vmatprep.subr.bf16.mxu0 %v4287_v5 }
 0x352   : > { %3665 = vmatpush3.bf16.xpose.msra.mxu1 %v4894_v15 }
 0x353   : > { %3666 = vmatprep.subr.bf16.mxu1 %v4287_v5 }
 0x358   : > { %3647 = vmatpush3.bf16.xpose.msra.mxu0 %v4903_v16 }
 0x359   : > { %3648 = vmatprep.subr.bf16.mxu0 %v4287_v5 }
 0x35a   : > { %3667 = vmatpush3.bf16.xpose.msra.mxu1 %v4908_v17 }
 0x35b   : > { %3668 = vmatprep.subr.bf16.mxu1 %v4287_v5 }
 0x360   : > { %3649 = vmatpush3.bf16.xpose.msra.mxu0 %v4919_v20 }
 0x361   : > { %3674 = vmatprep.subr.bf16.mxu0 %v4287_v5 }
 0x362   : > { %3669 = vmatpush3.bf16.xpose.msra.mxu1 %v4924_v21 }
 0x363   : > { %3694 = vmatprep.subr.bf16.mxu1 %v4287_v5 }
 0x367   : > { %3651 = vmatmul.mubr.bf16.vlgmr.msra.gmra.mxu0 %v1642_v27  ;;  %v5081_v27 = vld [vmem:[%s5530_s0 + $0x1f0] sm:$0xff]  }
 0x368   : > { %3675 = vmatpush3.bf16.xpose.msra.mxu0 %v4936_v26  ;;  %3690 = vmatprep.mubr.msk.bf16.mxu0 %vm4288_vm1, %v4287_v5  ;;  %5556 = vst [vmem:[#allocation6_spill] sm:$0xff] %v5081_v27 }
 0x369   : > { %3671 = vmatmul.mubr.bf16.vlgmr.msra.gmra.mxu1 %v1736_v29  ;;  %3676 = vmatprep.subr.bf16.mxu0 %v4287_v5  ;;  %v5090_v29 = vld [vmem:[%s5530_s0 + $0x1a8] sm:$0xff]  }
 0x36a   : > { %3695 = vmatpush3.bf16.xpose.msra.mxu1 %v4942_v28  ;;  %3710 = vmatprep.mubr.msk.bf16.mxu1 %vm4288_vm1, %v4287_v5 }
 0x36b   : > { %3696 = vmatprep.subr.bf16.mxu1 %v4287_v5 }
 0x370   : > { %3677 = vmatpush3.bf16.xpose.msra.mxu0 %v4956_v30 }
 0x371   : > { %3678 = vmatprep.subr.bf16.mxu0 %v4287_v5 }
 0x372   : > { %3697 = vmatpush3.bf16.xpose.msra.mxu1 %v4961_v31 }
 0x373   : > { %3698 = vmatprep.subr.bf16.mxu1 %v4287_v5 }
 0x378   : > { %3679 = vmatpush3.bf16.xpose.msra.mxu0 %v4970_v33 }
 0x379   : > { %3680 = vmatprep.subr.bf16.mxu0 %v4287_v5 }
 0x37a   : > { %3699 = vmatpush3.bf16.xpose.msra.mxu1 %v4975_v53 }
 0x37b   : > { %3700 = vmatprep.subr.bf16.mxu1 %v4287_v5 }
 0x380   : > { %3681 = vmatpush3.bf16.xpose.msra.mxu0 %v4984_v54 }
 0x381   : > { %3682 = vmatprep.subr.bf16.mxu0 %v4287_v5 }
 0x382   : > { %3701 = vmatpush3.bf16.xpose.msra.mxu1 %v4989_v55 }
 0x383   : > { %3702 = vmatprep.subr.bf16.mxu1 %v4287_v5 }
 0x388   : > { %3683 = vmatpush3.bf16.xpose.msra.mxu0 %v4998_v56 }
 0x389   : > { %3684 = vmatprep.subr.bf16.mxu0 %v4287_v5 }
 0x38a   : > { %3703 = vmatpush3.bf16.xpose.msra.mxu1 %v5003_v57 }
 0x38b   : > { %3704 = vmatprep.subr.bf16.mxu1 %v4287_v5 }
 0x390   : > { %3685 = vmatpush3.bf16.xpose.msra.mxu0 %v5012_v58 }
 0x391   : > { %3686 = vmatprep.subr.bf16.mxu0 %v4287_v5 }
 0x392   : > { %3705 = vmatpush3.bf16.xpose.msra.mxu1 %v5017_v59 }
 0x393   : > { %3706 = vmatprep.subr.bf16.mxu1 %v4287_v5 }
 0x398   : > { %3687 = vmatpush3.bf16.xpose.msra.mxu0 %v5026_v60 }
 0x399   : > { %3688 = vmatprep.subr.bf16.mxu0 %v4287_v5 }
 0x39a   : > { %3707 = vmatpush3.bf16.xpose.msra.mxu1 %v5031_v48 }
 0x39b   : > { %3708 = vmatprep.subr.bf16.mxu1 %v4287_v5 }
 0x3a0   : > { %3689 = vmatpush3.bf16.xpose.msra.mxu0 %v5042_v63 }
 0x3a1   : > { %3714 = vmatprep.subr.bf16.mxu0 %v4287_v5 }
 0x3a2   : > { %3709 = vmatpush3.bf16.xpose.msra.mxu1 %v5047_v0 }
 0x3a3   : > { %3734 = vmatprep.subr.bf16.mxu1 %v4287_v5 }
 0x3a7   : > { %3691 = vmatmul.mubr.bf16.vlgmr.msra.gmra.mxu0 %v1830_v18  ;;  %v5123_v18 = vld [vmem:[%s5530_s0 + $0x1d8] sm:$0xff]  }
 0x3a8   : > { %3715 = vmatpush3.bf16.xpose.msra.mxu0 %v5056_v6  ;;  %3730 = vmatprep.mubr.msk.bf16.mxu0 %vm4288_vm1, %v4287_v5  ;;  %5561 = vst [vmem:[#allocation11_spill] sm:$0xff] %v5123_v18 }
 0x3a9   : > { %3711 = vmatmul.mubr.bf16.vlgmr.msra.gmra.mxu1 %v1924_v23  ;;  %3716 = vmatprep.subr.bf16.mxu0 %v4287_v5  ;;  %v5132_v23 = vld [vmem:[%s5530_s0 + $0x190] sm:$0xff]  }
 0x3aa   : > { %3735 = vmatpush3.bf16.xpose.msra.mxu1 %v5062_v22  ;;  %3750 = vmatprep.mubr.msk.bf16.mxu1 %vm4288_vm1, %v4287_v5  ;;  %5562 = vst [vmem:[#allocation12_spill] sm:$0xff] %v5132_v23 }
 0x3ab   : > { %3736 = vmatprep.subr.bf16.mxu1 %v4287_v5 }
 0x3b0   : > { %3717 = vmatpush3.bf16.xpose.msra.mxu0 %v5076_v24 }
 0x3b1   : > { %3718 = vmatprep.subr.bf16.mxu0 %v4287_v5 }
 0x3b2   : > { %3737 = vmatpush3.bf16.xpose.msra.mxu1 %v5081_v27 }
 0x3b3   : > { %3738 = vmatprep.subr.bf16.mxu1 %v4287_v5 }
 0x3b8   : > { %3719 = vmatpush3.bf16.xpose.msra.mxu0 %v5090_v29 }
 0x3b9   : > { %3720 = vmatprep.subr.bf16.mxu0 %v4287_v5 }
 0x3ba   : > { %3739 = vmatpush3.bf16.xpose.msra.mxu1 %v5095_v62 }
 0x3bb   : > { %3740 = vmatprep.subr.bf16.mxu1 %v4287_v5 }
 0x3c0   : > { %3721 = vmatpush3.bf16.xpose.msra.mxu0 %v5104_v50 }
 0x3c1   : > { %3722 = vmatprep.subr.bf16.mxu0 %v4287_v5 }
 0x3c2   : > { %3741 = vmatpush3.bf16.xpose.msra.mxu1 %v5109_v2  ;;  %v5151_v2 = vld [vmem:[%s5530_s0 + $0x1c8] sm:$0xff]  }
 0x3c3   : > { %3742 = vmatprep.subr.bf16.mxu1 %v4287_v5  ;;  %5565 = vst [vmem:[#allocation15_spill] sm:$0xff] %v5151_v2 }
 0x3c8   : > { %3723 = vmatpush3.bf16.xpose.msra.mxu0 %v5118_v61  ;;  %v5167_v61 = vld [vmem:[%s5530_s0 + $0x1c0] sm:$0xff]  }
 0x3c9   : > { %3724 = vmatprep.subr.bf16.mxu0 %v4287_v5 }
 0x3ca   : > { %3743 = vmatpush3.bf16.xpose.msra.mxu1 %v5123_v18  ;;  %v5146_v18 = vld [vmem:[%s5530_s0 + $0x188] sm:$0xff]  }
 0x3cb   : > { %3744 = vmatprep.subr.bf16.mxu1 %v4287_v5  ;;  %5564 = vst [vmem:[#allocation14_spill] sm:$0xff] %v5146_v18 }
 0x3d0   : > { %3725 = vmatpush3.bf16.xpose.msra.mxu0 %v5132_v23  ;;  %v5162_v23 = vld [vmem:[%s5530_s0 + $0x180] sm:$0xff]  }
 0x3d1   : > { %3726 = vmatprep.subr.bf16.mxu0 %v4287_v5  ;;  %5566 = vst [vmem:[#allocation16_spill] sm:$0xff] %v5162_v23 }
 0x3d2   : > { %3745 = vmatpush3.bf16.xpose.msra.mxu1 %v5137_v25  ;;  %v1441_v25 = vcombine.high %v4913_v19, %v4913_v19 }
 0x3d3   : > { %3746 = vmatprep.subr.bf16.mxu1 %v4287_v5 }
 0x3d4   : > { %v3320_v62 = vpack.i.b16 %v1441_v25, %v1441_v25 }
 0x3d8   : > { %3727 = vmatpush3.bf16.xpose.msra.mxu0 %v5146_v18  ;;  %v1449_v18 = vunpack.i.h.s16 %v1441_v25 }
 0x3d9   : > { %3728 = vmatprep.subr.bf16.mxu0 %v4287_v5 }
 0x3da   : > { %3747 = vmatpush3.bf16.xpose.msra.mxu1 %v5151_v2  ;;  %v2108_v19 = vpack.i.b16 %v1449_v18, %v1449_v18  ;;  %v2018_v2 = vrot.slane %v3320_v62, %v4726_v51 }
 0x3db   : > { %3748 = vmatprep.subr.bf16.mxu1 %v4287_v5 }
 0x3dc   : > { %v2112_v27 = vrot.slane %v2108_v19, %v4726_v51 }
 0x3e0   : > { %3729 = vmatpush3.bf16.xpose.msra.mxu0 %v5162_v23 }
 0x3e1   : > { %3754 = vmatprep.subr.bf16.mxu0 %v4287_v5 }
 0x3e2   : > { %3749 = vmatpush3.bf16.xpose.msra.mxu1 %v5167_v61 }
 0x3e3   : > { %3774 = vmatprep.subr.bf16.mxu1 %v4287_v5 }
 0x3e7   : > { %3731 = vmatmul.mubr.bf16.vlgmr.msra.gmra.mxu0 %v2018_v2  ;;  %v1538_v50 = vpop.f32.mrf.mxu0 }
 0x3e8   : > { %v5178_v23 = vsel %vm2202_vm4, %v1538_v50, -1e+30  ;;  %3755 = vmatpush3.bf16.msra.mxu0 %v4676_v41  ;;  %3770 = vmatprep.mubr.msk.bf16.mxu0 %vm4288_vm1, %v4287_v5 }
 0x3e9   : > { %3751 = vmatmul.mubr.bf16.vlgmr.msra.gmra.mxu1 %v2112_v27  ;;  %v3612_v25 = vpop.f32.mrf.mxu0  ;;  %v1632_v18 = vpop.f32.mrf.mxu1  ;;  %v2214_v62 = vsel %vm2213_vm5, %v5178_v23, -inf  ;;  %3756 = vmatprep.subr.bf16.mxu0 %v4287_v5 }
 0x3ea   : > { %v5188_v51 = vsel %vm2202_vm4, %v1632_v18, -1e+30  ;;  %2215 = vmax.xlane.f32.xlu0 %v2214_v62  ;;  %3775 = vmatpush3.bf16.msra.mxu1 %v4742_v32 }
 0x3eb   : > { %v1541_v50 = vpop.f32.mrf.mxu0  ;;  %v3632_v41 = vpop.f32.mrf.mxu1  ;;  %v2217_v2 = vsel %vm2213_vm5, %v5188_v51, -inf  ;;  %3776 = vmatprep.subr.bf16.mxu1 %v4287_v5  ;;  %3790 = vmatprep.mubr.msk.bf16.mxu1 %vm4288_vm1, %v4287_v5 }
 0x3ec   : > { %2218 = vmax.xlane.f32.xlu1 %v2217_v2  ;;  %3757 = vmatpush3.bf16.msra.mxu0 %v4683_v42 }
 0x3ed   : > { %v3613_v27 = vpop.f32.mrf.mxu0  ;;  %v1635_v19 = vpop.f32.mrf.mxu1  ;;  %3758 = vmatprep.subr.bf16.mxu0 %v4287_v5 }
 0x3ee   : > { %3777 = vmatpush3.bf16.msra.mxu1 %v4751_v34 }
 0x3ef   : > { %v3633_v32 = vpop.f32.mrf.mxu1  ;;  %3778 = vmatprep.subr.bf16.mxu1 %v4287_v5 }
 0x3f0   : > { %3759 = vmatpush3.bf16.msra.mxu0 %v4690_v43 }
 0x3f1   : > { %3760 = vmatprep.subr.bf16.mxu0 %v4287_v5 }
 0x3f2   : > { %3779 = vmatpush3.bf16.msra.mxu1 %v4758_v35 }
 0x3f3   : > { %3780 = vmatprep.subr.bf16.mxu1 %v4287_v5 }
 0x3f4   : > { %3761 = vmatpush3.bf16.msra.mxu0 %v4697_v44 }
 0x3f5   : > { %3762 = vmatprep.subr.bf16.mxu0 %v4287_v5 }
 0x3f6   : > { %3781 = vmatpush3.bf16.msra.mxu1 %v4765_v36 }
 0x3f7   : > { %3782 = vmatprep.subr.bf16.mxu1 %v4287_v5 }
 0x3f8   : > { %3763 = vmatpush3.bf16.msra.mxu0 %v4704_v45 }
 0x3f9   : > { %3764 = vmatprep.subr.bf16.mxu0 %v4287_v5 }
 0x3fa   : > { %3783 = vmatpush3.bf16.msra.mxu1 %v4772_v37 }
 0x3fb   : > { %3784 = vmatprep.subr.bf16.mxu1 %v4287_v5 }
 0x3fc   : > { %3765 = vmatpush3.bf16.msra.mxu0 %v4711_v46 }
 0x3fd   : > { %3766 = vmatprep.subr.bf16.mxu0 %v4287_v5 }
 0x3fe   : > { %3785 = vmatpush3.bf16.msra.mxu1 %v4779_v38 }
 0x3ff   : > { %3786 = vmatprep.subr.bf16.mxu1 %v4287_v5 }
 0x400   : > { %3767 = vmatpush3.bf16.msra.mxu0 %v4718_v47 }
 0x401   : > { %3768 = vmatprep.subr.bf16.mxu0 %v4287_v5 }
 0x402   : > { %3787 = vmatpush3.bf16.msra.mxu1 %v4786_v39 }
 0x403   : > { %3788 = vmatprep.subr.bf16.mxu1 %v4287_v5 }
 0x404   : > { %3769 = vmatpush3.bf16.msra.mxu0 %v4793_v40 }
 0x405   : > { %3794 = vmatprep.subr.bf16.mxu0 %v4287_v5 }
 0x406   : > { %3789 = vmatpush3.bf16.msra.mxu1 %v4799_v52 }
 0x407   : > { %3814 = vmatprep.subr.bf16.mxu1 %v4287_v5 }
 0x427   : > { %v1726_v42 = vpop.f32.mrf.mxu0 }
 0x428   : > { %v2207_v43 = vsel %vm2202_vm4, %v1726_v42, -1e+30 }
 0x429   : > { %v3652_v44 = vpop.f32.mrf.mxu0  ;;  %v1820_v45 = vpop.f32.mrf.mxu1  ;;  %v2220_v46 = vsel %vm2213_vm5, %v2207_v43, -inf }
 0x42a   : > { %v2208_v47 = vsel %vm2202_vm4, %v1820_v45, -1e+30  ;;  %2221 = vmax.xlane.f32.xlu1 %v2220_v46 }
 0x42b   : > { %v1729_v34 = vpop.f32.mrf.mxu0  ;;  %v3672_v35 = vpop.f32.mrf.mxu1  ;;  %v2223_v38 = vsel %vm2213_vm5, %v2208_v47, -inf }
 0x42d   : > { %v3653_v36 = vpop.f32.mrf.mxu0  ;;  %v1823_v37 = vpop.f32.mrf.mxu1 }
 0x42e   : > { %2224 = vmax.xlane.f32.xlu1 %v2223_v38 }
 0x42f   : > { %v3673_v39 = vpop.f32.mrf.mxu1 }
 0x467   : > { %v1914_v40 = vpop.f32.mrf.mxu0 }
 0x468   : > { %v2209_v52 = vsel %vm2202_vm4, %v1914_v40, -1e+30 }
 0x469   : > { %v3692_v25 = vpop.f32.mrf.mxu0  ;;  %v2008_v18 = vpop.f32.mrf.mxu1  ;;  %v2226_v62 = vsel %vm2213_vm5, %v2209_v52, -inf }
 0x46a   : > { %v2210_v50 = vsel %vm2202_vm4, %v2008_v18, -1e+30  ;;  %2227 = vmax.xlane.f32.xlu1 %v2226_v62 }
 0x46b   : > { %v1917_v41 = vpop.f32.mrf.mxu0  ;;  %v3712_v2 = vpop.f32.mrf.mxu1  ;;  %v2229_v32 = vsel %vm2213_vm5, %v2210_v50, -inf }
 0x46d   : > { %v3693_v27 = vpop.f32.mrf.mxu0  ;;  %v2011_v19 = vpop.f32.mrf.mxu1 }
 0x46e   : > { %2230 = vmax.xlane.f32.xlu1 %v2229_v32 }
 0x46f   : > { %v3713_v42 = vpop.f32.mrf.mxu1 }
 0x473   : > { %v2216_v44 = vpop.xlane.xlu0 %2215 }
 0x474   : > { %v2238_v45 = vsub.f32 %v5178_v23, %v2216_v44 }
 0x475   : > { %v2219_v46 = vpop.xlane.xlu1 %2218 }
 0x476   : > { %v2246_v34 = vmul.f32 1.442695, %v2238_v45  ;;  %v2239_v35 = vsub.f32 %v5188_v51, %v2219_v46 }
 0x478   : > { %4222 = vpow2.f32 %v2246_v34  ;;  %v2248_v36 = vmul.f32 1.442695, %v2239_v35 }
 0x47a   : > { %4224 = vpow2.f32 %v2248_v36 }
 0x485   : > { %v4223_v37 = vpop.eup %4222 }
 0x486   : > { %v2262_v38 = vsel %vm2213_vm5, %v4223_v37, 0.0 }
 0x487   : > { %v4225_v39 = vpop.eup %4224  ;;  %2263 = vadd.xlane.f32.xlu1 %v2262_v38 }
 0x488   : > { %v2265_v40 = vsel %vm2213_vm5, %v4225_v39, 0.0 }
 0x48b   : > { %2266 = vadd.xlane.f32.xlu1 %v2265_v40 }
 0x4a7   : > { %v2102_v25 = vpop.f32.mrf.mxu0 }
 0x4a8   : > { %v5242_v18 = vsel %vm2202_vm4, %v2102_v25, -1e+30 }
 0x4a9   : > { %v3732_v23 = vpop.f32.mrf.mxu0  ;;  %v2196_v62 = vpop.f32.mrf.mxu1  ;;  %v2232_v51 = vsel %vm2213_vm5, %v5242_v18, -inf }
 0x4aa   : > { %v5248_v41 = vsel %vm2202_vm4, %v2196_v62, -1e+30  ;;  %2233 = vmax.xlane.f32.xlu1 %v2232_v51 }
 0x4ab   : > { %v2105_v2 = vpop.f32.mrf.mxu0  ;;  %v3752_v27 = vpop.f32.mrf.mxu1  ;;  %v2235_v42 = vsel %vm2213_vm5, %v5248_v41, -inf }
 0x4ad   : > { %v3733_v19 = vpop.f32.mrf.mxu0  ;;  %v2199_v32 = vpop.f32.mrf.mxu1 }
 0x4ae   : > { %2236 = vmax.xlane.f32.xlu1 %v2235_v42 }
 0x4af   : > { %v3753_v44 = vpop.f32.mrf.mxu1 }
 0x4b3   : > { %v2222_v45 = vpop.xlane.xlu1 %2221 }
 0x4b4   : > { %v2240_v46 = vsub.f32 %v2207_v43, %v2222_v45 }
 0x4b6   : > { %v2250_v34 = vmul.f32 1.442695, %v2240_v46 }
 0x4b7   : > { %v2225_v35 = vpop.xlane.xlu1 %2224 }
 0x4b8   : > { %4226 = vpow2.f32 %v2250_v34  ;;  %v2241_v36 = vsub.f32 %v2208_v47, %v2225_v35 }
 0x4ba   : > { %v2252_v38 = vmul.f32 1.442695, %v2241_v36 }
 0x4bc   : > { %4228 = vpow2.f32 %v2252_v38 }
 0x4c5   : > { %v5252_v40 = vpop.eup %4226 }
 0x4c6   : > { %v2268_v25 = vsel %vm2213_vm5, %v5252_v40, 0.0 }
 0x4c7   : > { %2269 = vadd.xlane.f32.xlu0 %v2268_v25 }
 0x4c9   : > { %v5256_v23 = vpop.eup %4228 }
 0x4ca   : > { %v2271_v62 = vsel %vm2213_vm5, %v5256_v23, 0.0 }
 0x4cb   : > { %2272 = vadd.xlane.f32.xlu1 %v2271_v62 }
 0x4f3   : > { %v2228_v51 = vpop.xlane.xlu1 %2227 }
 0x4f4   : > { %v2242_v43 = vsub.f32 %v2209_v52, %v2228_v51 }
 0x4f6   : > { %v2254_v2 = vmul.f32 1.442695, %v2242_v43 }
 0x4f7   : > { %v2231_v27 = vpop.xlane.xlu1 %2230 }
 0x4f8   : > { %4230 = vpow2.f32 %v2254_v2  ;;  %v2243_v47 = vsub.f32 %v2210_v50, %v2231_v27 }
 0x4fa   : > { %v2256_v19 = vmul.f32 1.442695, %v2243_v47 }
 0x4fc   : > { %4232 = vpow2.f32 %v2256_v19 }
 0x505   : > { %v5260_v32 = vpop.eup %4230 }
 0x506   : > { %v2274_v42 = vsel %vm2213_vm5, %v5260_v32, 0.0 }
 0x507   : > { %2275 = vadd.xlane.f32.xlu0 %v2274_v42 }
 0x509   : > { %v5264_v44 = vpop.eup %4232 }
 0x50a   : > { %v2277_v45 = vsel %vm2213_vm5, %v5264_v44, 0.0 }
 0x50b   : > { %2278 = vadd.xlane.f32.xlu1 %v2277_v45 }
 0x510   : > { %v2264_v46 = vpop.xlane.xlu1 %2263 }
 0x511   : > { %4234 = vrcp.f32 %v2264_v46 }
 0x514   : > { %v2267_v52 = vpop.xlane.xlu1 %2266 }
 0x515   : > { %4236 = vrcp.f32 %v2267_v52 }
 0x51e   : > { %v4235_v34 = vpop.eup %4234 }
 0x51f   : > { %v2294_v50 = vmul.f32 %v4235_v34, %v4223_v37  ;;  %v4183_v34 = vld [vmem:[%s5537_s7 + $0x30] sm:$0xff]  }
 0x521   : > { %v2333_v35 = vpack.c.bf16 %v2294_v50, %v2294_v50 }
 0x522   : > { %v4237_v36 = vpop.eup %4236 }
 0x523   : > { %3771 = vmatmul.mubr.bf16.vlgmr.msra.gmra.mxu0 %v2333_v35  ;;  %v2295_v38 = vmul.f32 %v4237_v36, %v4225_v39 }
 0x524   : > { %3795 = vmatpush3.bf16.msra.mxu0 %v4813_v1  ;;  %3810 = vmatprep.mubr.msk.bf16.mxu0 %vm4288_vm1, %v4287_v5 }
 0x525   : > { %v2310_v25 = vrot.slane %v2295_v38, 7  ;;  %v2334_v62 = vpack.c.bf16 %v2295_v38, %v2295_v38  ;;  %3796 = vmatprep.subr.bf16.mxu0 %v4287_v5 }
 0x527   : > { %3791 = vmatmul.mubr.bf16.vlgmr.msra.gmra.mxu1 %v2334_v62  ;;  %v2312_v51 = vsel %vm2311_vm6, %v2310_v25, %v2294_v50 }
 0x528   : > { %3797 = vmatpush3.bf16.msra.mxu0 %v4833_v7  ;;  %3815 = vmatpush3.bf16.msra.mxu1 %v4819_v3 }
 0x529   : > { %3798 = vmatprep.subr.bf16.mxu0 %v4287_v5  ;;  %3816 = vmatprep.subr.bf16.mxu1 %v4287_v5 }
 0x52a   : > { %3830 = vmatprep.mubr.msk.bf16.mxu1 %vm4288_vm1, %v4287_v5 }
 0x52c   : > { %3799 = vmatpush3.bf16.msra.mxu0 %v4847_v9  ;;  %3817 = vmatpush3.bf16.msra.mxu1 %v4838_v8 }
 0x52d   : > { %3800 = vmatprep.subr.bf16.mxu0 %v4287_v5  ;;  %3818 = vmatprep.subr.bf16.mxu1 %v4287_v5 }
 0x530   : > { %3801 = vmatpush3.bf16.msra.mxu0 %v4861_v11  ;;  %3819 = vmatpush3.bf16.msra.mxu1 %v4852_v10 }
 0x531   : > { %3802 = vmatprep.subr.bf16.mxu0 %v4287_v5  ;;  %3820 = vmatprep.subr.bf16.mxu1 %v4287_v5 }
 0x533   : > { %v2234_v1 = vpop.xlane.xlu1 %2233 }
 0x534   : > { %v2244_v3 = vsub.f32 %v5242_v18, %v2234_v1  ;;  %3803 = vmatpush3.bf16.msra.mxu0 %v4875_v12  ;;  %3821 = vmatpush3.bf16.msra.mxu1 %v4866_v4 }
 0x535   : > { %3804 = vmatprep.subr.bf16.mxu0 %v4287_v5  ;;  %3822 = vmatprep.subr.bf16.mxu1 %v4287_v5 }
 0x536   : > { %v2258_v7 = vmul.f32 1.442695, %v2244_v3 }
 0x537   : > { %v2237_v8 = vpop.xlane.xlu1 %2236 }
 0x538   : > { %4238 = vpow2.f32 %v2258_v7  ;;  %v2245_v9 = vsub.f32 %v5248_v41, %v2237_v8  ;;  %3805 = vmatpush3.bf16.msra.mxu0 %v4889_v14  ;;  %3823 = vmatpush3.bf16.msra.mxu1 %v4880_v13  ;;  %v4184_v8 = vld [vmem:[%s5537_s7 + $0x28] sm:$0xff]  }
 0x539   : > { %3806 = vmatprep.subr.bf16.mxu0 %v4287_v5  ;;  %3824 = vmatprep.subr.bf16.mxu1 %v4287_v5 }
 0x53a   : > { %v2260_v10 = vmul.f32 1.442695, %v2245_v9 }
 0x53c   : > { %4240 = vpow2.f32 %v2260_v10  ;;  %3807 = vmatpush3.bf16.msra.mxu0 %v4903_v16  ;;  %3825 = vmatpush3.bf16.msra.mxu1 %v4894_v15 }
 0x53d   : > { %3808 = vmatprep.subr.bf16.mxu0 %v4287_v5  ;;  %3826 = vmatprep.subr.bf16.mxu1 %v4287_v5 }
 0x540   : > { %3809 = vmatpush3.bf16.msra.mxu0 %v4919_v20  ;;  %3827 = vmatpush3.bf16.msra.mxu1 %v4908_v17 }
 0x541   : > { %3828 = vmatprep.subr.bf16.mxu1 %v4287_v5  ;;  %3834 = vmatprep.subr.bf16.mxu0 %v4287_v5 }
 0x544   : > { %3829 = vmatpush3.bf16.msra.mxu1 %v4924_v21 }
 0x545   : > { %v5306_v11 = vpop.eup %4238  ;;  %3854 = vmatprep.subr.bf16.mxu1 %v4287_v5 }
 0x546   : > { %v2280_v4 = vsel %vm2213_vm5, %v5306_v11, 0.0 }
 0x547   : > { %2281 = vadd.xlane.f32.xlu0 %v2280_v4 }
 0x549   : > { %v5311_v12 = vpop.eup %4240 }
 0x54a   : > { %v2283_v13 = vsel %vm2213_vm5, %v5311_v12, 0.0 }
 0x54b   : > { %2284 = vadd.xlane.f32.xlu1 %v2283_v13 }
 0x550   : > { %v2270_v14 = vpop.xlane.xlu0 %2269 }
 0x551   : > { %4242 = vrcp.f32 %v2270_v14  ;;  %v4185_v14 = vld [vmem:[%s5537_s7 + $0x20] sm:$0xff]  }
 0x554   : > { %v2273_v15 = vpop.xlane.xlu1 %2272 }
 0x555   : > { %4244 = vrcp.f32 %v2273_v15 }
 0x55e   : > { %v4243_v16 = vpop.eup %4242 }
 0x55f   : > { %v2296_v17 = vmul.f32 %v4243_v16, %v5252_v40 }
 0x561   : > { %v2313_v20 = vrot.slane %v2296_v17, 6  ;;  %v2335_v21 = vpack.c.bf16 %v2296_v17, %v2296_v17  ;;  %v4190_v17 = vld [vmem:[%s5536_s6 + $0x38] sm:$0xff]  }
 0x562   : > { %v4245_v37 = vpop.eup %4244 }
 0x563   : > { %3811 = vmatmul.mubr.bf16.vlgmr.msra.gmra.mxu0 %v2335_v21  ;;  %v2297_v39 = vmul.f32 %v4245_v37, %v5256_v23  ;;  %v2315_v18 = vsel %vm2314_vm7, %v2313_v20, %v2312_v51  ;;  %v5577_v23 = vld [vmem:[#allocation15_spill] sm:$0xff]  ;;  %v4186_v20 = vld [vmem:[%s5537_s7 + $0x18] sm:$0xff]   ;;  %v4191_v21 = vld [vmem:[%s5536_s6 + $0x30] sm:$0xff]  }
 0x564   : > { %3835 = vmatpush3.bf16.msra.mxu0 %v4936_v26  ;;  %3850 = vmatprep.mubr.msk.bf16.mxu0 %vm4288_vm1, %v4287_v5  ;;  %v4187_v37 = vld [vmem:[%s5537_s7 + $0x10] sm:$0xff]  }
 0x565   : > { %v2316_v41 = vrot.slane %v2297_v39, 5  ;;  %v2336_v43 = vpack.c.bf16 %v2297_v39, %v2297_v39  ;;  %3836 = vmatprep.subr.bf16.mxu0 %v4287_v5  ;;  %v4192_v39 = vld [vmem:[%s5536_s6 + $0x28] sm:$0xff]  }
 0x567   : > { %3831 = vmatmul.mubr.bf16.vlgmr.msra.gmra.mxu1 %v2336_v43  ;;  %v2318_v40 = vsel %vm2317_vm8, %v2316_v41, %v2315_v18  ;;  %v4188_v18 = vld [vmem:[%s5537_s7 + $0x8] sm:$0xff]   ;;  %v4193_v41 = vld [vmem:[%s5536_s6 + $0x20] sm:$0xff]  }
 0x568   : > { %3837 = vmatpush3.bf16.msra.mxu0 %v4956_v30  ;;  %3855 = vmatpush3.bf16.msra.mxu1 %v4942_v28  ;;  %v4189_v43 = vld [vmem:[%s5537_s7] sm:$0xff]  }
 0x569   : > { %3838 = vmatprep.subr.bf16.mxu0 %v4287_v5  ;;  %3856 = vmatprep.subr.bf16.mxu1 %v4287_v5 }
 0x56a   : > { %3870 = vmatprep.mubr.msk.bf16.mxu1 %vm4288_vm1, %v4287_v5 }
 0x56c   : > { %3839 = vmatpush3.bf16.msra.mxu0 %v4970_v33  ;;  %3857 = vmatpush3.bf16.msra.mxu1 %v4961_v31 }
 0x56d   : > { %3840 = vmatprep.subr.bf16.mxu0 %v4287_v5  ;;  %3858 = vmatprep.subr.bf16.mxu1 %v4287_v5 }
 0x570   : > { %3841 = vmatpush3.bf16.msra.mxu0 %v4984_v54  ;;  %3859 = vmatpush3.bf16.msra.mxu1 %v4975_v53 }
 0x571   : > { %3842 = vmatprep.subr.bf16.mxu0 %v4287_v5  ;;  %3860 = vmatprep.subr.bf16.mxu1 %v4287_v5 }
 0x574   : > { %3843 = vmatpush3.bf16.msra.mxu0 %v4998_v56  ;;  %3861 = vmatpush3.bf16.msra.mxu1 %v4989_v55 }
 0x575   : > { %3844 = vmatprep.subr.bf16.mxu0 %v4287_v5  ;;  %3862 = vmatprep.subr.bf16.mxu1 %v4287_v5 }
 0x578   : > { %3845 = vmatpush3.bf16.msra.mxu0 %v5012_v58  ;;  %3863 = vmatpush3.bf16.msra.mxu1 %v5003_v57  ;;  %v5567_v58 = vld [vmem:[#allocation6_spill] sm:$0xff] }
 0x579   : > { %3846 = vmatprep.subr.bf16.mxu0 %v4287_v5  ;;  %3864 = vmatprep.subr.bf16.mxu1 %v4287_v5 }
 0x57c   : > { %3847 = vmatpush3.bf16.msra.mxu0 %v5026_v60  ;;  %3865 = vmatpush3.bf16.msra.mxu1 %v5017_v59  ;;  %v5568_v59 = vld [vmem:[#allocation8_spill] sm:$0xff]  ;;  %v5569_v60 = vld [vmem:[#allocation7_spill] sm:$0xff] }
 0x57d   : > { %3848 = vmatprep.subr.bf16.mxu0 %v4287_v5  ;;  %3866 = vmatprep.subr.bf16.mxu1 %v4287_v5 }
 0x580   : > { %3849 = vmatpush3.bf16.msra.mxu0 %v5042_v63  ;;  %3867 = vmatpush3.bf16.msra.mxu1 %v5031_v48  ;;  %v5570_v48 = vld [vmem:[#allocation10_spill] sm:$0xff]  ;;  %v5571_v63 = vld [vmem:[#allocation9_spill] sm:$0xff] }
 0x581   : > { %3868 = vmatprep.subr.bf16.mxu1 %v4287_v5  ;;  %3874 = vmatprep.subr.bf16.mxu0 %v4287_v5 }
 0x584   : > { %3869 = vmatpush3.bf16.msra.mxu1 %v5047_v0  ;;  %v5572_v0 = vld [vmem:[#allocation12_spill] sm:$0xff] }
 0x585   : > { %3894 = vmatprep.subr.bf16.mxu1 %v4287_v5 }
 0x590   : > { %v2276_v26 = vpop.xlane.xlu0 %2275 }
 0x591   : > { %4246 = vrcp.f32 %v2276_v26  ;;  %v5578_v26 = vld [vmem:[#allocation5_spill] sm:$0xff] }
 0x594   : > { %v2279_v28 = vpop.xlane.xlu1 %2278 }
 0x595   : > { %4248 = vrcp.f32 %v2279_v28 }
 0x59e   : > { %v4247_v30 = vpop.eup %4246 }
 0x59f   : > { %v2298_v31 = vmul.f32 %v4247_v30, %v5260_v32  ;;  %v4182_v32 = vld [vmem:[%s5537_s7 + $0x38] sm:$0xff]  }
 0x5a1   : > { %v2319_v33 = vrot.slane %v2298_v31, 4  ;;  %v2337_v53 = vpack.c.bf16 %v2298_v31, %v2298_v31 }
 0x5a2   : > { %v4249_v54 = vpop.eup %4248 }
 0x5a3   : > { %3851 = vmatmul.mubr.bf16.vlgmr.msra.gmra.mxu0 %v2337_v53  ;;  %v5357_v55 = vmul.f32 %v4249_v54, %v5264_v44  ;;  %v2321_v56 = vsel %vm2320_vm9, %v2319_v33, %v2318_v40  ;;  %v4194_v40 = vld [vmem:[%s5536_s6 + $0x18] sm:$0xff]   ;;  %v4195_v33 = vld [vmem:[%s5536_s6 + $0x10] sm:$0xff]  }
 0x5a4   : > { %3875 = vmatpush3.bf16.msra.mxu0 %v5056_v6  ;;  %3890 = vmatprep.mubr.msk.bf16.mxu0 %vm4288_vm1, %v4287_v5  ;;  %v5573_v6 = vld [vmem:[#allocation11_spill] sm:$0xff] }
 0x5a5   : > { %v2338_v57 = vpack.c.bf16 %v5357_v55, %v5357_v55  ;;  %3876 = vmatprep.subr.bf16.mxu0 %v4287_v5  ;;  %v2322_v42 = vrot.slane %v5357_v55, 3 }
 0x5a7   : > { %3871 = vmatmul.mubr.bf16.vlgmr.msra.gmra.mxu1 %v2338_v57  ;;  %v2324_v38 = vsel %vm2323_vm10, %v2322_v42, %v2321_v56 }
 0x5a8   : > { %3877 = vmatpush3.bf16.msra.mxu0 %v5076_v24  ;;  %3895 = vmatpush3.bf16.msra.mxu1 %v5062_v22  ;;  %v5574_v22 = vld [vmem:[#allocation14_spill] sm:$0xff]  ;;  %v5575_v24 = vld [vmem:[#allocation13_spill] sm:$0xff] }
 0x5a9   : > { %3878 = vmatprep.subr.bf16.mxu0 %v4287_v5  ;;  %3896 = vmatprep.subr.bf16.mxu1 %v4287_v5 }
 0x5aa   : > { %3910 = vmatprep.mubr.msk.bf16.mxu1 %vm4288_vm1, %v4287_v5 }
 0x5ac   : > { %3879 = vmatpush3.bf16.msra.mxu0 %v5090_v29  ;;  %3897 = vmatpush3.bf16.msra.mxu1 %v5567_v58  ;;  %v5576_v29 = vld [vmem:[#allocation16_spill] sm:$0xff] }
 0x5ad   : > { %3880 = vmatprep.subr.bf16.mxu0 %v4287_v5  ;;  %3898 = vmatprep.subr.bf16.mxu1 %v4287_v5 }
 0x5b0   : > { %3881 = vmatpush3.bf16.msra.mxu0 %v5568_v59  ;;  %3899 = vmatpush3.bf16.msra.mxu1 %v5569_v60  ;;  %v4196_v60 = vld [vmem:[%s5536_s6 + $0x8] sm:$0xff]  }
 0x5b1   : > { %3882 = vmatprep.subr.bf16.mxu0 %v4287_v5  ;;  %3900 = vmatprep.subr.bf16.mxu1 %v4287_v5 }
 0x5b4   : > { %3883 = vmatpush3.bf16.msra.mxu0 %v5570_v48  ;;  %3901 = vmatpush3.bf16.msra.mxu1 %v5571_v63 }
 0x5b5   : > { %3884 = vmatprep.subr.bf16.mxu0 %v4287_v5  ;;  %3902 = vmatprep.subr.bf16.mxu1 %v4287_v5 }
 0x5b8   : > { %3885 = vmatpush3.bf16.msra.mxu0 %v5572_v0  ;;  %3903 = vmatpush3.bf16.msra.mxu1 %v5573_v6 }
 0x5b9   : > { %3886 = vmatprep.subr.bf16.mxu0 %v4287_v5  ;;  %3904 = vmatprep.subr.bf16.mxu1 %v4287_v5 }
 0x5bc   : > { %3887 = vmatpush3.bf16.msra.mxu0 %v5574_v22  ;;  %3905 = vmatpush3.bf16.msra.mxu1 %v5575_v24  ;;  %v4197_v24 = vld [vmem:[%s5536_s6] sm:$0xff]  }
 0x5bd   : > { %3888 = vmatprep.subr.bf16.mxu0 %v4287_v5  ;;  %3906 = vmatprep.subr.bf16.mxu1 %v4287_v5 }
 0x5c0   : > { %3889 = vmatpush3.bf16.msra.mxu0 %v5576_v29  ;;  %3907 = vmatpush3.bf16.msra.mxu1 %v5577_v23  ;;  %v4198_v23 = vld [vmem:[%s5539_s9 + $0x38] sm:$0xff]  }
 0x5c1   : > { %3914 = vmatprep.subr.bf16.mxu0 %v4287_v5  ;;  %3908 = vmatprep.subr.bf16.mxu1 %v4287_v5 }
 0x5c4   : > { %3909 = vmatpush3.bf16.msra.mxu1 %v5167_v61 }
 0x5c5   : > { %3934 = vmatprep.subr.bf16.mxu1 %v4287_v5 }
 0x5d0   : > { %v2282_v2 = vpop.xlane.xlu0 %2281 }
 0x5d1   : > { %4250 = vrcp.f32 %v2282_v2  ;;  %v4199_v2 = vld [vmem:[%s5539_s9 + $0x30] sm:$0xff]  }
 0x5d4   : > { %v2285_v27 = vpop.xlane.xlu1 %2284 }
 0x5d5   : > { %4252 = vrcp.f32 %v2285_v27  ;;  %v4200_v27 = vld [vmem:[%s5539_s9 + $0x28] sm:$0xff]  }
 0x5de   : > { %v4251_v47 = vpop.eup %4250 }
 0x5df   : > { %v2300_v19 = vmul.f32 %v4251_v47, %v5306_v11 }
 0x5e1   : > { %v2339_v44 = vpack.c.bf16 %v2300_v19, %v2300_v19  ;;  %v2325_v46 = vrot.slane %v2300_v19, 2 }
 0x5e2   : > { %v4253_v45 = vpop.eup %4252 }
 0x5e3   : > { %3891 = vmatmul.mubr.bf16.vlgmr.msra.gmra.mxu0 %v2339_v44  ;;  %v2375_v61 = vpop.f32.mrf.mxu0  ;;  %v2301_v52 = vmul.f32 %v4253_v45, %v5311_v12  ;;  %v2327_v25 = vsel %vm2326_vm11, %v2325_v46, %v2324_v38 }
 0x5e4   : > { %3915 = vmatpush3.bf16.msra.mxu0 %v4182_v32  ;;  %3930 = vmatprep.mubr.msk.bf16.mxu0 %vm4288_vm1, %v4287_v5  ;;  %v2661_v3 = vpack.c.bf16 %v2375_v61, %v2375_v61 }
 0x5e5   : > { %v3772_v50 = vpop.f32.mrf.mxu0  ;;  %3916 = vmatprep.subr.bf16.mxu0 %v4287_v5  ;;  %v2328_v35 = vrot.slane %v2301_v52, 1  ;;  %v2340_v36 = vpack.c.bf16 %v2301_v52, %v2301_v52 }
 0x5e6   : > { %v2797_v12 = vunpack.c.l.b16 %v2661_v3 }
 0x5e7   : > { %3911 = vmatmul.mubr.bf16.vlgmr.msra.gmra.mxu1 %v2340_v36  ;;  %v2378_v62 = vpop.f32.mrf.mxu0  ;;  %v2415_v51 = vpop.f32.mrf.mxu1  ;;  %v2330_v1 = vsel %vm2329_vm12, %v2328_v35, %v2327_v25 }
 0x5e8   : > { %3917 = vmatpush3.bf16.msra.mxu0 %v4183_v34  ;;  %v2662_v7 = vpack.c.bf16 %v2415_v51, %v2415_v51  ;;  %2332 = vst [vmem:[%s4382_s14] sm:$0xff] %v2330_v1  ;;  %3950 = vmatprep.mubr.msk.bf16.mxu1 %vm4288_vm1, %v4287_v5 }
 0x5e9   : > { %v3773_v9 = vpop.f32.mrf.mxu0  ;;  %v3792_v10 = vpop.f32.mrf.mxu1  ;;  %3918 = vmatprep.subr.bf16.mxu0 %v4287_v5  ;;  %3935 = vmatpush3.bf16.msra.mxu1 %v4190_v17 }
 0x5ea   : > { %v2798_v11 = vunpack.c.l.b16 %v2662_v7  ;;  %3936 = vmatprep.subr.bf16.mxu1 %v4287_v5 }
 0x5eb   : > { %v2418_v4 = vpop.f32.mrf.mxu1 }
 0x5ec   : > { %v2805_v13 = vrot.slane %v2798_v11, 7  ;;  %3919 = vmatpush3.bf16.msra.mxu0 %v4184_v8 }
 0x5ed   : > { %v3793_v15 = vpop.f32.mrf.mxu1  ;;  %3920 = vmatprep.subr.bf16.mxu0 %v4287_v5  ;;  %3937 = vmatpush3.bf16.msra.mxu1 %v4191_v21 }
 0x5ee   : > { %v2806_v16 = vsel %vm2311_vm6, %v2805_v13, %v2797_v12  ;;  %3938 = vmatprep.subr.bf16.mxu1 %v4287_v5 }
 0x5f0   : > { %3921 = vmatpush3.bf16.msra.mxu0 %v4185_v14 }
 0x5f1   : > { %3922 = vmatprep.subr.bf16.mxu0 %v4287_v5  ;;  %3939 = vmatpush3.bf16.msra.mxu1 %v4192_v39 }
 0x5f2   : > { %3940 = vmatprep.subr.bf16.mxu1 %v4287_v5 }
 0x5f4   : > { %3923 = vmatpush3.bf16.msra.mxu0 %v4186_v20 }
 0x5f5   : > { %3924 = vmatprep.subr.bf16.mxu0 %v4287_v5  ;;  %3941 = vmatpush3.bf16.msra.mxu1 %v4193_v41 }
 0x5f6   : > { %3942 = vmatprep.subr.bf16.mxu1 %v4287_v5 }
 0x5f8   : > { %3925 = vmatpush3.bf16.msra.mxu0 %v4187_v37 }
 0x5f9   : > { %3926 = vmatprep.subr.bf16.mxu0 %v4287_v5  ;;  %3943 = vmatpush3.bf16.msra.mxu1 %v4194_v40  ;;  %v4202_v40 = vld [vmem:[%s5539_s9 + $0x18] sm:$0xff]  }
 0x5fa   : > { %3944 = vmatprep.subr.bf16.mxu1 %v4287_v5 }
 0x5fc   : > { %3927 = vmatpush3.bf16.msra.mxu0 %v4188_v18 }
 0x5fd   : > { %3928 = vmatprep.subr.bf16.mxu0 %v4287_v5  ;;  %3945 = vmatpush3.bf16.msra.mxu1 %v4195_v33  ;;  %v3353_v33 = vld [vmem:[%s5538_s8] ss:$0 sm:$0xff] }
 0x5fe   : > { %3946 = vmatprep.subr.bf16.mxu1 %v4287_v5 }
 0x600   : > { %3929 = vmatpush3.bf16.msra.mxu0 %v4189_v43  ;;  %v4201_v43 = vld [vmem:[%s5539_s9 + $0x20] sm:$0xff]  }
 0x601   : > { %3954 = vmatprep.subr.bf16.mxu0 %v4287_v5  ;;  %3947 = vmatpush3.bf16.msra.mxu1 %v4196_v60 }
 0x602   : > { %3948 = vmatprep.subr.bf16.mxu1 %v4287_v5 }
 0x603   : > { %3931 = vmatmul.mubr.bf16.vlgmr.msra.gmra.mxu0 %v5578_v26  ;;  %v4203_v26 = vld [vmem:[%s5539_s9 + $0x10] sm:$0xff]  }
 0x604   : > { %3970 = vmatprep.mubr.msk.bf16.mxu0 %vm4288_vm1, %v4287_v5  ;;  %3955 = vmatpush3.bf16.msra.mxu0 %v4198_v23 }
 0x605   : > { %3949 = vmatpush3.bf16.msra.mxu1 %v4197_v24  ;;  %3956 = vmatprep.subr.bf16.mxu0 %v4287_v5 }
 0x608   : > { %3957 = vmatpush3.bf16.msra.mxu0 %v4199_v2 }
 0x609   : > { %3958 = vmatprep.subr.bf16.mxu0 %v4287_v5 }
 0x60c   : > { %3959 = vmatpush3.bf16.msra.mxu0 %v4200_v27 }
 0x60d   : > { %3960 = vmatprep.subr.bf16.mxu0 %v4287_v5 }
 0x610   : > { %3961 = vmatpush3.bf16.msra.mxu0 %v4201_v43 }
 0x611   : > { %3962 = vmatprep.subr.bf16.mxu0 %v4287_v5 }
 0x614   : > { %3963 = vmatpush3.bf16.msra.mxu0 %v4202_v40 }
 0x615   : > { %3964 = vmatprep.subr.bf16.mxu0 %v4287_v5 }
 0x618   : > { %3965 = vmatpush3.bf16.msra.mxu0 %v4203_v26 }
 0x619   : > { %3966 = vmatprep.subr.bf16.mxu0 %v4287_v5 }
 0x623   : > { %v2455_v28 = vpop.f32.mrf.mxu0 }
 0x624   : > { %v2663_v30 = vpack.c.bf16 %v2455_v28, %v2455_v28  ;;  %v4204_v28 = vld [vmem:[%s5539_s9 + $0x8] sm:$0xff]  }
 0x625   : > { %v3812_v31 = vpop.f32.mrf.mxu0  ;;  %3967 = vmatpush3.bf16.msra.mxu0 %v4204_v28 }
 0x626   : > { %v2799_v53 = vunpack.c.l.b16 %v2663_v30  ;;  %3968 = vmatprep.subr.bf16.mxu0 %v4287_v5  ;;  %v4205_v30 = vld [vmem:[%s5539_s9] sm:$0xff]  }
 0x627   : > { %v2458_v54 = vpop.f32.mrf.mxu0  ;;  %v2495_v55 = vpop.f32.mrf.mxu1  ;;  %v3354_v5 = vld [vmem:[%s5540_s10] ss:$0 sm:$0xff] }
 0x628   : > { %v2807_v56 = vrot.slane %v2799_v53, 6  ;;  %v2664_v57 = vpack.c.bf16 %v2495_v55, %v2495_v55 }
 0x629   : > { %v3813_v58 = vpop.f32.mrf.mxu0  ;;  %v3832_v59 = vpop.f32.mrf.mxu1  ;;  %3969 = vmatpush3.bf16.msra.mxu0 %v4205_v30 }
 0x62a   : > { %v2808_v48 = vsel %vm2314_vm7, %v2807_v56, %v2806_v16  ;;  %v2800_v63 = vunpack.c.l.b16 %v2664_v57 }
 0x62b   : > { %v2498_v0 = vpop.f32.mrf.mxu1 }
 0x62c   : > { %v2809_v6 = vrot.slane %v2800_v63, 5 }
 0x62d   : > { %v3833_v22 = vpop.f32.mrf.mxu1 }
 0x62e   : > { %v2810_v29 = vsel %vm2317_vm8, %v2809_v6, %v2808_v48 }
 0x663   : > { %v2535_v47 = vpop.f32.mrf.mxu0 }
 0x664   : > { %v2665_v19 = vpack.c.bf16 %v2535_v47, %v2535_v47 }
 0x665   : > { %v3852_v32 = vpop.f32.mrf.mxu0 }
 0x666   : > { %v2801_v42 = vunpack.c.l.b16 %v2665_v19 }
 0x667   : > { %v2538_v44 = vpop.f32.mrf.mxu0  ;;  %v2575_v45 = vpop.f32.mrf.mxu1 }
 0x668   : > { %v2811_v46 = vrot.slane %v2801_v42, 4  ;;  %v2666_v36 = vpack.c.bf16 %v2575_v45, %v2575_v45 }
 0x669   : > { %v3853_v61 = vpop.f32.mrf.mxu0  ;;  %v3872_v52 = vpop.f32.mrf.mxu1 }
 0x66a   : > { %v2812_v34 = vsel %vm2320_vm9, %v2811_v46, %v2810_v29  ;;  %v2802_v25 = vunpack.c.l.b16 %v2666_v36 }
 0x66b   : > { %v2578_v50 = vpop.f32.mrf.mxu1 }
 0x66c   : > { %v2813_v8 = vrot.slane %v2802_v25, 3 }
 0x66d   : > { %v3873_v35 = vpop.f32.mrf.mxu1 }
 0x66e   : > { %v2814_v14 = vsel %vm2323_vm10, %v2813_v8, %v2812_v34 }
 0x6a3   : > { %v2615_v38 = vpop.f32.mrf.mxu0 }
 0x6a4   : > { %v2667_v62 = vpack.c.bf16 %v2615_v38, %v2615_v38 }
 0x6a5   : > { %v3892_v51 = vpop.f32.mrf.mxu0 }
 0x6a6   : > { %v2803_v1 = vunpack.c.l.b16 %v2667_v62 }
 0x6a7   : > { %v2618_v3 = vpop.f32.mrf.mxu0  ;;  %v2655_v7 = vpop.f32.mrf.mxu1 }
 0x6a8   : > { %v2668_v9 = vpack.c.bf16 %v2655_v7, %v2655_v7  ;;  %v2815_v10 = vrot.slane %v2803_v1, 2 }
 0x6a9   : > { %v3893_v11 = vpop.f32.mrf.mxu0  ;;  %v3912_v4 = vpop.f32.mrf.mxu1 }
 0x6aa   : > { %v2804_v12 = vunpack.c.l.b16 %v2668_v9  ;;  %v2816_v16 = vsel %vm2326_vm11, %v2815_v10, %v2814_v14 }
 0x6ab   : > { %v2658_v13 = vpop.f32.mrf.mxu1 }
 0x6ac   : > { %v2817_v15 = vrot.slane %v2804_v12, 1 }
 0x6ad   : > { %v3913_v17 = vpop.f32.mrf.mxu1 }
 0x6ae   : > { %v2818_v20 = vsel %vm2329_vm12, %v2817_v15, %v2816_v16 }
 0x6af   : > { %v2819_v21 = vpack.c.b16 %v2818_v20, %v2818_v20 }
 0x6b1   : > { %3951 = vmatmul.mubr.bf16.vlgmr.msra.gmra.mxu1 %v2819_v21 }
 0x6c3   : > { %v2783_v37 = vpop.f32.mrf.mxu0 }
 0x6c5   : > { %v3932_v39 = vpop.f32.mrf.mxu0 }
 0x6c7   : > { %v2786_v18 = vpop.f32.mrf.mxu0 }
 0x6c9   : > { %v3933_v41 = vpop.f32.mrf.mxu0 }
 0x771   : > { %v2903_v31 = vpop.f32.mrf.mxu1 }
 0x772   : > { %v2904_v53 = vadd.f32 %v2903_v31, %v2783_v37 }
 0x773   : > { %v3952_v54 = vpop.f32.mrf.mxu1 }
 0x774   : > { %v2916_v55 = vadd.f32 %v3353_v33, %v2904_v53 }
 0x775   : > { %v2906_v56 = vpop.f32.mrf.mxu1 }
 0x776   : > { %4254 = vtanh.f32 %v2916_v55 }
 0x777   : > { %v3953_v57 = vpop.f32.mrf.mxu1 }
 0x783   : > { %v4255_v58 = vpop.eup %4254 }
 0x784   : > { %v2918_v59 = vpack.c.bf16 %v4255_v58, %v4255_v58 }
 0x786   : > { %3971 = vmatmul.mubr.bf16.vlgmr.msra.gmra.mxu0 %v2918_v59 }
 0x846   : > { %v3024_v60 = vpop.f32.mrf.mxu0 }
 0x847   : > { %v3025_v48 = vadd.f32 %v3354_v5, %v3024_v60 }
 0x848   : > { %v3972_v63 = vpop.f32.mrf.mxu0 }
 0x849   : > { %3030 = vmax.xlane.f32.xlu0 %v3025_v48 }
 0x84a   : > { %v3027_v0 = vpop.f32.mrf.mxu0 }
 0x84c   : > { %v3973_v6 = vpop.f32.mrf.mxu0 }
 0x8d2   : > { %v3031_v22 = vpop.xlane.xlu0 %3030 }
 0x8d3   : > { %v3032_v24 = vsub.f32 %v3025_v48, %v3031_v22  ;;  %vm3041_vm13 = vcmp.eq.f32.partialorder %v3025_v48, %v3031_v22 }
 0x8d4   : > { %v3042_v29 = vsel %vm3041_vm13, %v4525_v49, 128 }
 0x8d5   : > { %v3033_v23 = vmul.f32 1.442695, %v3032_v24  ;;  %v3044_v2 = vshra.s32 %v3042_v29, 16  ;;  %v3043_v19 = vand.u32 65535, %v3042_v29 }
 0x8d7   : > { %4256 = vpow2.f32 %v3033_v23  ;;  %v3046_v27 = vcvt.s32.f32 %v3044_v2  ;;  %v3045_v42 = vcvt.s32.f32 %v3043_v19 }
 0x8d9   : > { %3047 = vmin.xlane.f32.xlu1 %v3046_v27 }
 0x8e4   : > { %v4257_v47 = vpop.eup %4256 }
 0x8e5   : > { %3035 = vadd.xlane.f32.xlu0 %v4257_v47 }
 0x962   : > { %v3048_v32 = vpop.xlane.xlu1 %3047 }
 0x963   : > { %vm3049_vm14 = vcmp.eq.f32.partialorder %v3046_v27, %v3048_v32  ;;  %v3054_v49 = vcvt.f32.s32 %v3048_v32 }
 0x964   : > { %v3050_v44 = vsel %vm3049_vm14, %v3045_v42, inf }
 0x965   : > { %3051 = vmin.xlane.f32.xlu1 %v3050_v44  ;;  %v3055_v50 = vshll.u32 %v3054_v49, 16 }
 0x96e   : > { %v3036_v45 = vpop.xlane.xlu0 %3035 }
 0x96f   : > { %4258 = vlog2.f32 %v3036_v45 }
 0x97c   : > { %v4259_v46 = vpop.eup %4258 }
 0x97d   : > { %v3038_v61 = vmul.f32 0.6931472, %v4259_v46 }
 0x97f   : > { %v3039_v52 = vsub.f32 %v3032_v24, %v3038_v61 }
 0x981   : > { %3040 = vst [vmem:[%s4377_s29] sm:$0xff] %v3039_v52 }
 0x9ee   : > { %v3052_v34 = vpop.xlane.xlu1 %3051 }
 0x9ef   : > { %v3053_v35 = vcvt.f32.s32 %v3052_v34 }
 0x9f1   : > { %v3056_v36 = vadd.s32 %v3055_v50, %v3053_v35 }
 0x9f3   : > { %3058 = vst.msk [vmem:[#allocation4] sm:$0xff] %vm3057_vm15, %v3056_v36 }
 0x9f4 PF: > { %s23_s23 = sadd.s32 1, %s4282_s23   ;;  %s5579_s21 = smov %s4278_s22 }
 0x9f5   : > { %p20_p6 = scmp.ge.s32.totalorder %s23_s23, 10   ;;  %s5580_s22 = smov %s5582_s24 }
 0x9f7   :  { %22 = sbr.rel (!%p20_p6) target bundleno = 2 (0x2), region = 110 }

</bundles_post_ra>
